<compile_context>
chip_gen: v5e
topology: v5e:2x2
jax: 0.10.0
libtpu: 0.0.40
codegen_flags: <defaults>
</compile_context>

<pallas_src>
import functools

import jax
import jax.numpy as jnp
from jax.experimental import pallas as pl
from jax.experimental.pallas import tpu as pltpu

EPS = 1e-5          # nn.InstanceNorm2d default eps
DEPTH = 4
TWIDTH = 2          # kernel height
KWIDTH = 3          # kernel width


def _dense_block_kernel(x_ref, m_ref, w_ref, p_ref, o_ref, skip_ref,
                        *, C, H, W, Wp, depth):
    """Fused depth-layer dense block for one sample.

    x_ref   : (1, C, H*Wp)       bf16  width-padded, row-flattened input
    m_ref   : (1, H*Wp)          f32   1.0 at valid output columns, 0.0 at junk cols
    w_ref   : (depth*6, C, Cmax) bf16  per-tap conv weights (scratch channel order)
    p_ref   : (C, 3*depth)       f32   per layer [gamma, beta, alpha] columns
    o_ref   : (1, C, H*Wp)             last layer's activation (junk cols included)
    skip_ref: (Cmax, L)          bf16  flattened zero-haloed dense skip buffer
    """
    Cmax = C * depth
    pad_h = 2 ** (depth - 1)                 # causal pad of the largest dilation
    HWp = H * Wp
    L = skip_ref.shape[1]
    inv_hw = 1.0 / float(H * W)
    data0 = pad_h * Wp                       # lane offset of the first data row

    mask = m_ref[...]                        # (1, HWp) f32

    # Zero only the regions the per-step writes never cover but taps may read:
    # the top causal halo rows (+ left pad of the first data row) and the slack row.
    skip_ref[:, 0:data0 + Wp] = jnp.zeros((Cmax, data0 + Wp), skip_ref.dtype)
    skip_ref[:, data0 + HWp:L] = jnp.zeros((Cmax, L - (data0 + HWp)), skip_ref.dtype)

    # Drop the (already width-padded, flattened, bf16) input into channel block 0.
    skip_ref[0:C, data0:data0 + HWp] = x_ref[0]

    for i in range(depth):
        dil = 2 ** i
        cin = C * (i + 1)                    # channels this layer actually consumes

        # Causal dilated 2x3 conv as six small MXU matmuls accumulated in f32; every
        # tap is a contiguous lane window of the zero-haloed scratch (no slab concat).
        y = None
        for kh in range(TWIDTH):
            row0 = pad_h - dil + kh * dil
            for kw in range(KWIDTH):
                start = row0 * Wp + kw
                tap = i * TWIDTH * KWIDTH + kh * KWIDTH + kw
                part = jnp.dot(w_ref[tap, :, 0:cin],
                               skip_ref[0:cin, start:start + HWp],
                               preferred_element_type=jnp.float32)   # (C, HWp)
                y = part if y is None else y + part
        # Conv bias omitted: InstanceNorm's mean subtraction cancels it exactly.

        # InstanceNorm2d(affine) folded into one scale/shift; single-pass stats over
        # the valid columns only (mask zeroes junk columns), variance clamped >= 0.
        g = p_ref[:, 3 * i:3 * i + 1]                                # (C, 1)
        bt = p_ref[:, 3 * i + 1:3 * i + 2]
        al = p_ref[:, 3 * i + 2:3 * i + 3]
        ym = y * mask
        mean = jnp.sum(ym, axis=1, keepdims=True) * inv_hw           # (C, 1)
        var = jnp.sum(ym * ym, axis=1, keepdims=True) * inv_hw - mean * mean
        var = jnp.maximum(var, 0.0)
        scale = g * jax.lax.rsqrt(var + EPS)
        shift = bt - mean * scale
        yn = y * scale + shift

        act = jnp.where(yn >= 0, yn, yn * al)                        # per-channel PReLU

        if i + 1 < depth:
            # Dense concat == write this layer's masked bf16 output into its channel
            # block, shifted by the 1-lane left pad.  Masking keeps the width halos
            # (and the next row's left pad) at zero.
            c0 = C * (i + 1)
            skip_ref[c0:c0 + C, data0 + 1:data0 + 1 + HWp] = \
                (act * mask).astype(skip_ref.dtype)
        else:
            o_ref[0] = act.astype(o_ref.dtype)


def _pack_weights(params, C, depth):
    """Pack HWIO conv weights into per-tap (C, Cmax) matmul matrices (bf16).

    The PyTorch input-channel order for layer i is [out_{i-1}, ..., out_0, x]
    (torch.cat([out, skip], 1)); the kernel scratch stores channels oldest-first
    [x, out_0, ..., out_{i-1}], so the channel blocks are reversed here.  Columns
    past the layer's true fan-in are zero-padded but never read (the kernel slices
    each tap matrix to the layer's real cin).
    """
    Cmax = C * depth
    mats = []
    for i in range(depth):
        w = params[i][0]                                         # (2, 3, cin, C) HWIO
        blocks = [w[:, :, (i - b) * C:(i - b + 1) * C, :] for b in range(i + 1)]
        w_buf = jnp.concatenate(blocks, axis=2)                  # (2, 3, cin, C)
        w_buf = jnp.pad(w_buf, ((0, 0), (0, 0), (0, Cmax - C * (i + 1)), (0, 0)))
        for kh in range(TWIDTH):
            for kw in range(KWIDTH):
                mats.append(jnp.transpose(w_buf[kh, kw], (1, 0)))    # (C, Cmax)
    return jnp.stack(mats, axis=0).astype(jnp.bfloat16)         # (depth*6, C, Cmax)


def dilated_dense_net_forward(x_nchw, params, depth=DEPTH):
    """Forward pass matching the PyTorch DilatedDenseNet. x_nchw: (N, C, H, W)."""
    N, C, H, W = x_nchw.shape
    Cmax = C * depth
    pad_h = 2 ** (depth - 1)

    # Padded row width: >= W+2 (1 left + 1 right width pad) and chosen so the
    # flattened extent H*Wp is a multiple of 128 lanes (lane-dense stores).
    Wp = W + 2
    while (H * Wp) % 128 != 0:
        Wp += 1
    HWp = H * Wp
    L = (H + pad_h + 1) * Wp       # scratch lanes per channel (+1 row of slack)

    # Width-pad once + flatten rows so every in-kernel view is a contiguous lane
    # window (no in-kernel reshapes/transposes); MXU-facing tensors are bf16.
    x_flat = jnp.pad(x_nchw, ((0, 0), (0, 0), (0, 0), (1, Wp - W - 1)))
    x_flat = x_flat.reshape(N, C, HWp).astype(jnp.bfloat16)

    # Valid-output-column mask for the flattened (H, Wp) layout (f32 for stats).
    mask = (jnp.arange(HWp) % Wp < W).astype(jnp.float32).reshape(1, HWp)

    wmats = _pack_weights(params, C, depth)                      # (depth*6, C, Cmax)
    norm_p = jnp.concatenate(
        [p[j].reshape(C, 1) for p in params for j in (2, 3, 4)],
        axis=1)                                                  # (C, 3*depth) f32

    kernel = functools.partial(_dense_block_kernel,
                               C=C, H=H, W=W, Wp=Wp, depth=depth)
    out_flat = pl.pallas_call(
        kernel,
        out_shape=jax.ShapeDtypeStruct((N, C, HWp), x_nchw.dtype),
        grid=(N,),
        in_specs=[
            pl.BlockSpec((1, C, HWp), lambda n: (n, 0, 0)),
            pl.BlockSpec((1, HWp), lambda n: (0, 0)),
            pl.BlockSpec((depth * TWIDTH * KWIDTH, C, Cmax), lambda n: (0, 0, 0)),
            pl.BlockSpec((C, 3 * depth), lambda n: (0, 0)),
        ],
        out_specs=pl.BlockSpec((1, C, HWp), lambda n: (n, 0, 0)),
        scratch_shapes=[pltpu.VMEM((Cmax, L), jnp.bfloat16)],
        compiler_params=pltpu.CompilerParams(
            dimension_semantics=("parallel",)),
    )(x_flat, mask, wmats, norm_p)

    # Strip the junk columns per row and restore (N, C, H, W).
    return out_flat.reshape(N, C, H, Wp)[..., :W]


def reference_forward(x_nchw, params, depth=DEPTH, mxu_dtype=None):
    """Pure-JAX reference with the original module semantics (incl. conv bias).

    With mxu_dtype=jnp.bfloat16 the conv operands (dense-skip activations and
    weights) are rounded exactly where the Pallas kernel rounds them, enabling a
    tight comparison; mxu_dtype=None is the full-f32 module.
    """
    x = jnp.transpose(x_nchw, (0, 2, 3, 1))                      # NCHW -> NHWC
    N, H, W, C = x.shape
    skip = x.astype(mxu_dtype) if mxu_dtype is not None else x
    out = None
    for i in range(depth):
        dil = 2 ** i
        xp = jnp.pad(skip, ((0, 0), (dil, 0), (1, 1), (0, 0)))
        w, b, g, bt, a = params[i]
        if mxu_dtype is not None:
            w = w.astype(mxu_dtype)
        cout = w.shape[-1]
        acc = jnp.zeros((N, H, W, cout), jnp.float32)
        for kh in range(TWIDTH):
            for kw in range(KWIDTH):
                patch = xp[:, kh * dil: kh * dil + H, kw: kw + W, :]
                acc = acc + jnp.einsum('nhwi,io->nhwo', patch, w[kh, kw],
                                       preferred_element_type=jnp.float32)
        y = acc + b
        mean = jnp.mean(y, axis=(1, 2), keepdims=True)
        var = jnp.mean((y - mean) ** 2, axis=(1, 2), keepdims=True)
        yn = (y - mean) * jax.lax.rsqrt(var + EPS) * g + bt
        out = jnp.where(yn >= 0, yn, yn * a)
        nxt = out.astype(mxu_dtype) if mxu_dtype is not None else out
        skip = jnp.concatenate([nxt, skip], axis=-1)
    return jnp.transpose(out, (0, 3, 1, 2))                      # NHWC -> NCHW


def init_params(key, in_channels, depth=DEPTH):
    """Deterministic synthetic parameters (shapes follow the module __init__)."""
    params = []
    for i in range(depth):
        cin = in_channels * (i + 1)
        key, k1, k2, k3, k4 = jax.random.split(key, 5)
        fan_in = cin * TWIDTH * KWIDTH
        # conv weight in HWIO layout: (kh, kw, cin, cout); cin ordered like
        # torch.cat([out, skip], 1) (newest first).
        w = jax.random.normal(k1, (TWIDTH, KWIDTH, cin, in_channels),
                              jnp.float32) / jnp.sqrt(float(fan_in))
        b = 0.1 * jax.random.normal(k2, (1, 1, in_channels), jnp.float32)
        gamma = 1.0 + 0.1 * jax.random.normal(k3, (1, 1, in_channels), jnp.float32)
        beta = 0.1 * jax.random.normal(k4, (1, 1, in_channels), jnp.float32)
        alpha = jnp.full((1, 1, in_channels), 0.25, jnp.float32)  # PReLU default
        params.append((w, b, gamma, beta, alpha))
    return params


if __name__ == "__main__":
    key = jax.random.PRNGKey(0)
    kx, kp = jax.random.split(key)

    N, C, H, W = 2, 4, 16, 16          # small shapes; in_channels=4, depth=4
    x = jax.random.normal(kx, (N, C, H, W), jnp.float32)
    params = init_params(kp, C, DEPTH)

    out = dilated_dense_net_forward(x, params, depth=DEPTH)
    out = jax.block_until_ready(out)
    assert out.shape == (N, C, H, W), out.shape

    # Tight check against a reference whose conv operands are rounded to bf16 at the
    # same points as the kernel (validates indexing / halo / norm / concat logic).
    ref_bf16 = reference_forward(x, params, depth=DEPTH, mxu_dtype=jnp.bfloat16)
    if not bool(jnp.allclose(out, ref_bf16, rtol=2e-3, atol=2e-3)):
        max_err = float(jnp.max(jnp.abs(out - ref_bf16)))
        raise AssertionError(f"mismatch vs bf16-operand reference, max err {max_err}")

    # Looser check against the full-f32 module semantics; documents the (reviewer
    # requested) bf16-MXU-operand precision trade.
    ref_f32 = reference_forward(x, params, depth=DEPTH)
    if not bool(jnp.allclose(out, ref_f32, rtol=5e-2, atol=5e-2)):
        max_err = float(jnp.max(jnp.abs(out - ref_f32)))
        raise AssertionError(f"mismatch vs f32 reference, max err {max_err}")

    print("KERNEL_OK")
</pallas_src>

<mosaic_0001>
module attributes {stable_mosaic.version = 11 : i64} {
  func.func @_dense_block_kernel(%arg0: i32, %arg1: memref<1x4x384xbf16, #tpu.memory_space<vmem>>, %arg2: memref<1x384xf32, #tpu.memory_space<vmem>>, %arg3: memref<24x4x16xbf16, #tpu.memory_space<vmem>>, %arg4: memref<4x12xf32, #tpu.memory_space<vmem>>, %arg5: memref<1x4x384xf32, #tpu.memory_space<vmem>>, %arg6: memref<16x600xbf16, #tpu.memory_space<vmem>>) attributes {dimension_semantics = [#tpu.dimension_semantics<parallel>], iteration_bounds = array<i64: 2>, scalar_prefetch = 0 : i64, scratch_operands = 1 : i64, tpu.core_type = #tpu.core_type<tc>, window_params = [{transform_indices = @transform_0, window_bounds = array<i64: 1, 4, 384>}, {pipeline_mode = #tpu.pipeline_mode<synchronous>, transform_indices = @transform_1, window_bounds = array<i64: 1, 384>}, {pipeline_mode = #tpu.pipeline_mode<synchronous>, transform_indices = @transform_2, window_bounds = array<i64: 24, 4, 16>}, {pipeline_mode = #tpu.pipeline_mode<synchronous>, transform_indices = @transform_3, window_bounds = array<i64: 4, 12>}, {transform_indices = @transform_4, window_bounds = array<i64: 1, 4, 384>}]} {
    %c0 = arith.constant 0 : index
    %c0_0 = arith.constant 0 : index
    %0 = vector.load %arg2[%c0, %c0_0] : memref<1x384xf32, #tpu.memory_space<vmem>>, vector<1x384xf32>
    %cst = arith.constant 0.000000e+00 : bf16
    %1 = vector.broadcast %cst : bf16 to vector<16x216xbf16>
    %c0_1 = arith.constant 0 : index
    %c0_2 = arith.constant 0 : index
    %2 = vector.load %arg6[%c0_1, %c0_2] : memref<16x600xbf16, #tpu.memory_space<vmem>>, vector<16x216xbf16>
    tpu.vector_store %arg6[%c0_1, %c0_2], %1 {strides = array<i32>} : memref<16x600xbf16, #tpu.memory_space<vmem>>, vector<16x216xbf16>,
    %cst_3 = arith.constant 0.000000e+00 : bf16
    %3 = vector.broadcast %cst_3 : bf16 to vector<16x24xbf16>
    %c0_4 = arith.constant 0 : index
    %c576 = arith.constant 576 : index
    %4 = vector.load %arg6[%c0_4, %c576] : memref<16x600xbf16, #tpu.memory_space<vmem>>, vector<16x24xbf16>
    tpu.vector_store %arg6[%c0_4, %c576], %3 {strides = array<i32>} : memref<16x600xbf16, #tpu.memory_space<vmem>>, vector<16x24xbf16>,
    %c0_5 = arith.constant 0 : index
    %c0_6 = arith.constant 0 : index
    %c0_7 = arith.constant 0 : index
    %5 = vector.load %arg1[%c0_5, %c0_6, %c0_7] : memref<1x4x384xbf16, #tpu.memory_space<vmem>>, vector<1x4x384xbf16>
    %6 = vector.shape_cast %5 : vector<1x4x384xbf16> to vector<4x384xbf16>
    %c0_8 = arith.constant 0 : index
    %c192 = arith.constant 192 : index
    %7 = vector.load %arg6[%c0_8, %c192] : memref<16x600xbf16, #tpu.memory_space<vmem>>, vector<4x384xbf16>
    tpu.vector_store %arg6[%c0_8, %c192], %6 {strides = array<i32>} : memref<16x600xbf16, #tpu.memory_space<vmem>>, vector<4x384xbf16>,
    %c0_9 = arith.constant 0 : index
    %c0_10 = arith.constant 0 : index
    %c0_11 = arith.constant 0 : index
    %8 = vector.load %arg3[%c0_9, %c0_10, %c0_11] : memref<24x4x16xbf16, #tpu.memory_space<vmem>>, vector<1x4x4xbf16>
    %9 = vector.shape_cast %8 : vector<1x4x4xbf16> to vector<4x4xbf16>
    %c0_12 = arith.constant 0 : index
    %c168 = arith.constant 168 : index
    %10 = vector.load %arg6[%c0_12, %c168] : memref<16x600xbf16, #tpu.memory_space<vmem>>, vector<4x384xbf16>
    %cst_13 = arith.constant dense<0.000000e+00> : vector<4x384xf32>
    %11 = tpu.matmul %9, %10, %cst_13 {dimension_numbers = #tpu.dot_dimension_numbers<[1], [0], [0], [1], [0, 0, 1, 1], [], []>} : vector<4x4xbf16>, vector<4x384xbf16>, vector<4x384xf32> -> vector<4x384xf32>
    %c1 = arith.constant 1 : index
    %c0_14 = arith.constant 0 : index
    %c0_15 = arith.constant 0 : index
    %12 = vector.load %arg3[%c1, %c0_14, %c0_15] : memref<24x4x16xbf16, #tpu.memory_space<vmem>>, vector<1x4x4xbf16>
    %13 = vector.shape_cast %12 : vector<1x4x4xbf16> to vector<4x4xbf16>
    %c0_16 = arith.constant 0 : index
    %c169 = arith.constant 169 : index
    %14 = vector.load %arg6[%c0_16, %c169] : memref<16x600xbf16, #tpu.memory_space<vmem>>, vector<4x384xbf16>
    %cst_17 = arith.constant dense<0.000000e+00> : vector<4x384xf32>
    %15 = tpu.matmul %13, %14, %cst_17 {dimension_numbers = #tpu.dot_dimension_numbers<[1], [0], [0], [1], [0, 0, 1, 1], [], []>} : vector<4x4xbf16>, vector<4x384xbf16>, vector<4x384xf32> -> vector<4x384xf32>
    %16 = arith.addf %11, %15 : vector<4x384xf32>
    %c2 = arith.constant 2 : index
    %c0_18 = arith.constant 0 : index
    %c0_19 = arith.constant 0 : index
    %17 = vector.load %arg3[%c2, %c0_18, %c0_19] : memref<24x4x16xbf16, #tpu.memory_space<vmem>>, vector<1x4x4xbf16>
    %18 = vector.shape_cast %17 : vector<1x4x4xbf16> to vector<4x4xbf16>
    %c0_20 = arith.constant 0 : index
    %c170 = arith.constant 170 : index
    %19 = vector.load %arg6[%c0_20, %c170] : memref<16x600xbf16, #tpu.memory_space<vmem>>, vector<4x384xbf16>
    %cst_21 = arith.constant dense<0.000000e+00> : vector<4x384xf32>
    %20 = tpu.matmul %18, %19, %cst_21 {dimension_numbers = #tpu.dot_dimension_numbers<[1], [0], [0], [1], [0, 0, 1, 1], [], []>} : vector<4x4xbf16>, vector<4x384xbf16>, vector<4x384xf32> -> vector<4x384xf32>
    %21 = arith.addf %16, %20 : vector<4x384xf32>
    %c3 = arith.constant 3 : index
    %c0_22 = arith.constant 0 : index
    %c0_23 = arith.constant 0 : index
    %22 = vector.load %arg3[%c3, %c0_22, %c0_23] : memref<24x4x16xbf16, #tpu.memory_space<vmem>>, vector<1x4x4xbf16>
    %23 = vector.shape_cast %22 : vector<1x4x4xbf16> to vector<4x4xbf16>
    %c0_24 = arith.constant 0 : index
    %c192_25 = arith.constant 192 : index
    %24 = vector.load %arg6[%c0_24, %c192_25] : memref<16x600xbf16, #tpu.memory_space<vmem>>, vector<4x384xbf16>
    %cst_26 = arith.constant dense<0.000000e+00> : vector<4x384xf32>
    %25 = tpu.matmul %23, %24, %cst_26 {dimension_numbers = #tpu.dot_dimension_numbers<[1], [0], [0], [1], [0, 0, 1, 1], [], []>} : vector<4x4xbf16>, vector<4x384xbf16>, vector<4x384xf32> -> vector<4x384xf32>
    %26 = arith.addf %21, %25 : vector<4x384xf32>
    %c4 = arith.constant 4 : index
    %c0_27 = arith.constant 0 : index
    %c0_28 = arith.constant 0 : index
    %27 = vector.load %arg3[%c4, %c0_27, %c0_28] : memref<24x4x16xbf16, #tpu.memory_space<vmem>>, vector<1x4x4xbf16>
    %28 = vector.shape_cast %27 : vector<1x4x4xbf16> to vector<4x4xbf16>
    %c0_29 = arith.constant 0 : index
    %c193 = arith.constant 193 : index
    %29 = vector.load %arg6[%c0_29, %c193] : memref<16x600xbf16, #tpu.memory_space<vmem>>, vector<4x384xbf16>
    %cst_30 = arith.constant dense<0.000000e+00> : vector<4x384xf32>
    %30 = tpu.matmul %28, %29, %cst_30 {dimension_numbers = #tpu.dot_dimension_numbers<[1], [0], [0], [1], [0, 0, 1, 1], [], []>} : vector<4x4xbf16>, vector<4x384xbf16>, vector<4x384xf32> -> vector<4x384xf32>
    %31 = arith.addf %26, %30 : vector<4x384xf32>
    %c5 = arith.constant 5 : index
    %c0_31 = arith.constant 0 : index
    %c0_32 = arith.constant 0 : index
    %32 = vector.load %arg3[%c5, %c0_31, %c0_32] : memref<24x4x16xbf16, #tpu.memory_space<vmem>>, vector<1x4x4xbf16>
    %33 = vector.shape_cast %32 : vector<1x4x4xbf16> to vector<4x4xbf16>
    %c0_33 = arith.constant 0 : index
    %c194 = arith.constant 194 : index
    %34 = vector.load %arg6[%c0_33, %c194] : memref<16x600xbf16, #tpu.memory_space<vmem>>, vector<4x384xbf16>
    %cst_34 = arith.constant dense<0.000000e+00> : vector<4x384xf32>
    %35 = tpu.matmul %33, %34, %cst_34 {dimension_numbers = #tpu.dot_dimension_numbers<[1], [0], [0], [1], [0, 0, 1, 1], [], []>} : vector<4x4xbf16>, vector<4x384xbf16>, vector<4x384xf32> -> vector<4x384xf32>
    %36 = arith.addf %31, %35 : vector<4x384xf32>
    %c0_35 = arith.constant 0 : index
    %c0_36 = arith.constant 0 : index
    %37 = vector.load %arg4[%c0_35, %c0_36] : memref<4x12xf32, #tpu.memory_space<vmem>>, vector<4x1xf32>
    %c0_37 = arith.constant 0 : index
    %c1_38 = arith.constant 1 : index
    %38 = vector.load %arg4[%c0_37, %c1_38] : memref<4x12xf32, #tpu.memory_space<vmem>>, vector<4x1xf32>
    %c0_39 = arith.constant 0 : index
    %c2_40 = arith.constant 2 : index
    %39 = vector.load %arg4[%c0_39, %c2_40] : memref<4x12xf32, #tpu.memory_space<vmem>>, vector<4x1xf32>
    %40 = vector.broadcast %0 : vector<1x384xf32> to vector<4x384xf32>
    %41 = arith.mulf %36, %40 : vector<4x384xf32>
    %cst_41 = arith.constant dense<0.000000e+00> : vector<4xf32>
    %42 = vector.multi_reduction <add>, %41, %cst_41 [1] : vector<4x384xf32> to vector<4xf32>
    %43 = vector.shape_cast %42 : vector<4xf32> to vector<4x1xf32>
    %cst_42 = arith.constant 3.906250e-03 : f32
    %44 = vector.broadcast %cst_42 : f32 to vector<4x1xf32>
    %45 = arith.mulf %43, %44 : vector<4x1xf32>
    %46 = arith.mulf %41, %41 : vector<4x384xf32>
    %cst_43 = arith.constant dense<0.000000e+00> : vector<4xf32>
    %47 = vector.multi_reduction <add>, %46, %cst_43 [1] : vector<4x384xf32> to vector<4xf32>
    %48 = vector.shape_cast %47 : vector<4xf32> to vector<4x1xf32>
    %cst_44 = arith.constant 3.906250e-03 : f32
    %49 = vector.broadcast %cst_44 : f32 to vector<4x1xf32>
    %50 = arith.mulf %48, %49 : vector<4x1xf32>
    %51 = arith.mulf %45, %45 : vector<4x1xf32>
    %52 = arith.subf %50, %51 : vector<4x1xf32>
    %cst_45 = arith.constant 0.000000e+00 : f32
    %53 = vector.broadcast %cst_45 : f32 to vector<4x1xf32>
    %54 = arith.maximumf %52, %53 : vector<4x1xf32>
    %cst_46 = arith.constant 9.99999974E-6 : f32
    %55 = vector.broadcast %cst_46 : f32 to vector<4x1xf32>
    %56 = arith.addf %54, %55 : vector<4x1xf32>
    %57 = math.rsqrt %56 : vector<4x1xf32>
    %58 = arith.mulf %37, %57 : vector<4x1xf32>
    %59 = arith.mulf %45, %58 : vector<4x1xf32>
    %60 = arith.subf %38, %59 : vector<4x1xf32>
    %61 = vector.broadcast %58 : vector<4x1xf32> to vector<4x384xf32>
    %62 = arith.mulf %36, %61 : vector<4x384xf32>
    %63 = vector.broadcast %60 : vector<4x1xf32> to vector<4x384xf32>
    %64 = arith.addf %62, %63 : vector<4x384xf32>
    %cst_47 = arith.constant 0.000000e+00 : f32
    %65 = vector.broadcast %cst_47 : f32 to vector<4x384xf32>
    %66 = arith.cmpf oge, %64, %65 : vector<4x384xf32>
    %67 = vector.broadcast %39 : vector<4x1xf32> to vector<4x384xf32>
    %68 = arith.mulf %64, %67 : vector<4x384xf32>
    %69 = arith.select %66, %64, %68 : vector<4x384xi1>, vector<4x384xf32>
    %70 = vector.broadcast %0 : vector<1x384xf32> to vector<4x384xf32>
    %71 = arith.mulf %69, %70 : vector<4x384xf32>
    %72 = arith.truncf %71 : vector<4x384xf32> to vector<4x384xbf16>
    %c4_48 = arith.constant 4 : index
    %c193_49 = arith.constant 193 : index
    %73 = vector.load %arg6[%c4_48, %c193_49] : memref<16x600xbf16, #tpu.memory_space<vmem>>, vector<4x384xbf16>
    tpu.vector_store %arg6[%c4_48, %c193_49], %72 {strides = array<i32>} : memref<16x600xbf16, #tpu.memory_space<vmem>>, vector<4x384xbf16>,
    %c6 = arith.constant 6 : index
    %c0_50 = arith.constant 0 : index
    %c0_51 = arith.constant 0 : index
    %74 = vector.load %arg3[%c6, %c0_50, %c0_51] : memref<24x4x16xbf16, #tpu.memory_space<vmem>>, vector<1x4x8xbf16>
    %75 = vector.shape_cast %74 : vector<1x4x8xbf16> to vector<4x8xbf16>
    %c0_52 = arith.constant 0 : index
    %c144 = arith.constant 144 : index
    %76 = vector.load %arg6[%c0_52, %c144] : memref<16x600xbf16, #tpu.memory_space<vmem>>, vector<8x384xbf16>
    %cst_53 = arith.constant dense<0.000000e+00> : vector<4x384xf32>
    %77 = tpu.matmul %75, %76, %cst_53 {dimension_numbers = #tpu.dot_dimension_numbers<[1], [0], [0], [1], [0, 0, 1, 1], [], []>} : vector<4x8xbf16>, vector<8x384xbf16>, vector<4x384xf32> -> vector<4x384xf32>
    %c7 = arith.constant 7 : index
    %c0_54 = arith.constant 0 : index
    %c0_55 = arith.constant 0 : index
    %78 = vector.load %arg3[%c7, %c0_54, %c0_55] : memref<24x4x16xbf16, #tpu.memory_space<vmem>>, vector<1x4x8xbf16>
    %79 = vector.shape_cast %78 : vector<1x4x8xbf16> to vector<4x8xbf16>
    %c0_56 = arith.constant 0 : index
    %c145 = arith.constant 145 : index
    %80 = vector.load %arg6[%c0_56, %c145] : memref<16x600xbf16, #tpu.memory_space<vmem>>, vector<8x384xbf16>
    %cst_57 = arith.constant dense<0.000000e+00> : vector<4x384xf32>
    %81 = tpu.matmul %79, %80, %cst_57 {dimension_numbers = #tpu.dot_dimension_numbers<[1], [0], [0], [1], [0, 0, 1, 1], [], []>} : vector<4x8xbf16>, vector<8x384xbf16>, vector<4x384xf32> -> vector<4x384xf32>
    %82 = arith.addf %77, %81 : vector<4x384xf32>
    %c8 = arith.constant 8 : index
    %c0_58 = arith.constant 0 : index
    %c0_59 = arith.constant 0 : index
    %83 = vector.load %arg3[%c8, %c0_58, %c0_59] : memref<24x4x16xbf16, #tpu.memory_space<vmem>>, vector<1x4x8xbf16>
    %84 = vector.shape_cast %83 : vector<1x4x8xbf16> to vector<4x8xbf16>
    %c0_60 = arith.constant 0 : index
    %c146 = arith.constant 146 : index
    %85 = vector.load %arg6[%c0_60, %c146] : memref<16x600xbf16, #tpu.memory_space<vmem>>, vector<8x384xbf16>
    %cst_61 = arith.constant dense<0.000000e+00> : vector<4x384xf32>
    %86 = tpu.matmul %84, %85, %cst_61 {dimension_numbers = #tpu.dot_dimension_numbers<[1], [0], [0], [1], [0, 0, 1, 1], [], []>} : vector<4x8xbf16>, vector<8x384xbf16>, vector<4x384xf32> -> vector<4x384xf32>
    %87 = arith.addf %82, %86 : vector<4x384xf32>
    %c9 = arith.constant 9 : index
    %c0_62 = arith.constant 0 : index
    %c0_63 = arith.constant 0 : index
    %88 = vector.load %arg3[%c9, %c0_62, %c0_63] : memref<24x4x16xbf16, #tpu.memory_space<vmem>>, vector<1x4x8xbf16>
    %89 = vector.shape_cast %88 : vector<1x4x8xbf16> to vector<4x8xbf16>
    %c0_64 = arith.constant 0 : index
    %c192_65 = arith.constant 192 : index
    %90 = vector.load %arg6[%c0_64, %c192_65] : memref<16x600xbf16, #tpu.memory_space<vmem>>, vector<8x384xbf16>
    %cst_66 = arith.constant dense<0.000000e+00> : vector<4x384xf32>
    %91 = tpu.matmul %89, %90, %cst_66 {dimension_numbers = #tpu.dot_dimension_numbers<[1], [0], [0], [1], [0, 0, 1, 1], [], []>} : vector<4x8xbf16>, vector<8x384xbf16>, vector<4x384xf32> -> vector<4x384xf32>
    %92 = arith.addf %87, %91 : vector<4x384xf32>
    %c10 = arith.constant 10 : index
    %c0_67 = arith.constant 0 : index
    %c0_68 = arith.constant 0 : index
    %93 = vector.load %arg3[%c10, %c0_67, %c0_68] : memref<24x4x16xbf16, #tpu.memory_space<vmem>>, vector<1x4x8xbf16>
    %94 = vector.shape_cast %93 : vector<1x4x8xbf16> to vector<4x8xbf16>
    %c0_69 = arith.constant 0 : index
    %c193_70 = arith.constant 193 : index
    %95 = vector.load %arg6[%c0_69, %c193_70] : memref<16x600xbf16, #tpu.memory_space<vmem>>, vector<8x384xbf16>
    %cst_71 = arith.constant dense<0.000000e+00> : vector<4x384xf32>
    %96 = tpu.matmul %94, %95, %cst_71 {dimension_numbers = #tpu.dot_dimension_numbers<[1], [0], [0], [1], [0, 0, 1, 1], [], []>} : vector<4x8xbf16>, vector<8x384xbf16>, vector<4x384xf32> -> vector<4x384xf32>
    %97 = arith.addf %92, %96 : vector<4x384xf32>
    %c11 = arith.constant 11 : index
    %c0_72 = arith.constant 0 : index
    %c0_73 = arith.constant 0 : index
    %98 = vector.load %arg3[%c11, %c0_72, %c0_73] : memref<24x4x16xbf16, #tpu.memory_space<vmem>>, vector<1x4x8xbf16>
    %99 = vector.shape_cast %98 : vector<1x4x8xbf16> to vector<4x8xbf16>
    %c0_74 = arith.constant 0 : index
    %c194_75 = arith.constant 194 : index
    %100 = vector.load %arg6[%c0_74, %c194_75] : memref<16x600xbf16, #tpu.memory_space<vmem>>, vector<8x384xbf16>
    %cst_76 = arith.constant dense<0.000000e+00> : vector<4x384xf32>
    %101 = tpu.matmul %99, %100, %cst_76 {dimension_numbers = #tpu.dot_dimension_numbers<[1], [0], [0], [1], [0, 0, 1, 1], [], []>} : vector<4x8xbf16>, vector<8x384xbf16>, vector<4x384xf32> -> vector<4x384xf32>
    %102 = arith.addf %97, %101 : vector<4x384xf32>
    %c0_77 = arith.constant 0 : index
    %c3_78 = arith.constant 3 : index
    %103 = vector.load %arg4[%c0_77, %c3_78] : memref<4x12xf32, #tpu.memory_space<vmem>>, vector<4x1xf32>
    %c0_79 = arith.constant 0 : index
    %c4_80 = arith.constant 4 : index
    %104 = vector.load %arg4[%c0_79, %c4_80] : memref<4x12xf32, #tpu.memory_space<vmem>>, vector<4x1xf32>
    %c0_81 = arith.constant 0 : index
    %c5_82 = arith.constant 5 : index
    %105 = vector.load %arg4[%c0_81, %c5_82] : memref<4x12xf32, #tpu.memory_space<vmem>>, vector<4x1xf32>
    %106 = vector.broadcast %0 : vector<1x384xf32> to vector<4x384xf32>
    %107 = arith.mulf %102, %106 : vector<4x384xf32>
    %cst_83 = arith.constant dense<0.000000e+00> : vector<4xf32>
    %108 = vector.multi_reduction <add>, %107, %cst_83 [1] : vector<4x384xf32> to vector<4xf32>
    %109 = vector.shape_cast %108 : vector<4xf32> to vector<4x1xf32>
    %cst_84 = arith.constant 3.906250e-03 : f32
    %110 = vector.broadcast %cst_84 : f32 to vector<4x1xf32>
    %111 = arith.mulf %109, %110 : vector<4x1xf32>
    %112 = arith.mulf %107, %107 : vector<4x384xf32>
    %cst_85 = arith.constant dense<0.000000e+00> : vector<4xf32>
    %113 = vector.multi_reduction <add>, %112, %cst_85 [1] : vector<4x384xf32> to vector<4xf32>
    %114 = vector.shape_cast %113 : vector<4xf32> to vector<4x1xf32>
    %cst_86 = arith.constant 3.906250e-03 : f32
    %115 = vector.broadcast %cst_86 : f32 to vector<4x1xf32>
    %116 = arith.mulf %114, %115 : vector<4x1xf32>
    %117 = arith.mulf %111, %111 : vector<4x1xf32>
    %118 = arith.subf %116, %117 : vector<4x1xf32>
    %cst_87 = arith.constant 0.000000e+00 : f32
    %119 = vector.broadcast %cst_87 : f32 to vector<4x1xf32>
    %120 = arith.maximumf %118, %119 : vector<4x1xf32>
    %cst_88 = arith.constant 9.99999974E-6 : f32
    %121 = vector.broadcast %cst_88 : f32 to vector<4x1xf32>
    %122 = arith.addf %120, %121 : vector<4x1xf32>
    %123 = math.rsqrt %122 : vector<4x1xf32>
    %124 = arith.mulf %103, %123 : vector<4x1xf32>
    %125 = arith.mulf %111, %124 : vector<4x1xf32>
    %126 = arith.subf %104, %125 : vector<4x1xf32>
    %127 = vector.broadcast %124 : vector<4x1xf32> to vector<4x384xf32>
    %128 = arith.mulf %102, %127 : vector<4x384xf32>
    %129 = vector.broadcast %126 : vector<4x1xf32> to vector<4x384xf32>
    %130 = arith.addf %128, %129 : vector<4x384xf32>
    %cst_89 = arith.constant 0.000000e+00 : f32
    %131 = vector.broadcast %cst_89 : f32 to vector<4x384xf32>
    %132 = arith.cmpf oge, %130, %131 : vector<4x384xf32>
    %133 = vector.broadcast %105 : vector<4x1xf32> to vector<4x384xf32>
    %134 = arith.mulf %130, %133 : vector<4x384xf32>
    %135 = arith.select %132, %130, %134 : vector<4x384xi1>, vector<4x384xf32>
    %136 = vector.broadcast %0 : vector<1x384xf32> to vector<4x384xf32>
    %137 = arith.mulf %135, %136 : vector<4x384xf32>
    %138 = arith.truncf %137 : vector<4x384xf32> to vector<4x384xbf16>
    %c8_90 = arith.constant 8 : index
    %c193_91 = arith.constant 193 : index
    %139 = vector.load %arg6[%c8_90, %c193_91] : memref<16x600xbf16, #tpu.memory_space<vmem>>, vector<4x384xbf16>
    tpu.vector_store %arg6[%c8_90, %c193_91], %138 {strides = array<i32>} : memref<16x600xbf16, #tpu.memory_space<vmem>>, vector<4x384xbf16>,
    %c12 = arith.constant 12 : index
    %c0_92 = arith.constant 0 : index
    %c0_93 = arith.constant 0 : index
    %140 = vector.load %arg3[%c12, %c0_92, %c0_93] : memref<24x4x16xbf16, #tpu.memory_space<vmem>>, vector<1x4x12xbf16>
    %141 = vector.shape_cast %140 : vector<1x4x12xbf16> to vector<4x12xbf16>
    %c0_94 = arith.constant 0 : index
    %c96 = arith.constant 96 : index
    %142 = vector.load %arg6[%c0_94, %c96] : memref<16x600xbf16, #tpu.memory_space<vmem>>, vector<12x384xbf16>
    %cst_95 = arith.constant dense<0.000000e+00> : vector<4x384xf32>
    %143 = tpu.matmul %141, %142, %cst_95 {dimension_numbers = #tpu.dot_dimension_numbers<[1], [0], [0], [1], [0, 0, 1, 1], [], []>} : vector<4x12xbf16>, vector<12x384xbf16>, vector<4x384xf32> -> vector<4x384xf32>
    %c13 = arith.constant 13 : index
    %c0_96 = arith.constant 0 : index
    %c0_97 = arith.constant 0 : index
    %144 = vector.load %arg3[%c13, %c0_96, %c0_97] : memref<24x4x16xbf16, #tpu.memory_space<vmem>>, vector<1x4x12xbf16>
    %145 = vector.shape_cast %144 : vector<1x4x12xbf16> to vector<4x12xbf16>
    %c0_98 = arith.constant 0 : index
    %c97 = arith.constant 97 : index
    %146 = vector.load %arg6[%c0_98, %c97] : memref<16x600xbf16, #tpu.memory_space<vmem>>, vector<12x384xbf16>
    %cst_99 = arith.constant dense<0.000000e+00> : vector<4x384xf32>
    %147 = tpu.matmul %145, %146, %cst_99 {dimension_numbers = #tpu.dot_dimension_numbers<[1], [0], [0], [1], [0, 0, 1, 1], [], []>} : vector<4x12xbf16>, vector<12x384xbf16>, vector<4x384xf32> -> vector<4x384xf32>
    %148 = arith.addf %143, %147 : vector<4x384xf32>
    %c14 = arith.constant 14 : index
    %c0_100 = arith.constant 0 : index
    %c0_101 = arith.constant 0 : index
    %149 = vector.load %arg3[%c14, %c0_100, %c0_101] : memref<24x4x16xbf16, #tpu.memory_space<vmem>>, vector<1x4x12xbf16>
    %150 = vector.shape_cast %149 : vector<1x4x12xbf16> to vector<4x12xbf16>
    %c0_102 = arith.constant 0 : index
    %c98 = arith.constant 98 : index
    %151 = vector.load %arg6[%c0_102, %c98] : memref<16x600xbf16, #tpu.memory_space<vmem>>, vector<12x384xbf16>
    %cst_103 = arith.constant dense<0.000000e+00> : vector<4x384xf32>
    %152 = tpu.matmul %150, %151, %cst_103 {dimension_numbers = #tpu.dot_dimension_numbers<[1], [0], [0], [1], [0, 0, 1, 1], [], []>} : vector<4x12xbf16>, vector<12x384xbf16>, vector<4x384xf32> -> vector<4x384xf32>
    %153 = arith.addf %148, %152 : vector<4x384xf32>
    %c15 = arith.constant 15 : index
    %c0_104 = arith.constant 0 : index
    %c0_105 = arith.constant 0 : index
    %154 = vector.load %arg3[%c15, %c0_104, %c0_105] : memref<24x4x16xbf16, #tpu.memory_space<vmem>>, vector<1x4x12xbf16>
    %155 = vector.shape_cast %154 : vector<1x4x12xbf16> to vector<4x12xbf16>
    %c0_106 = arith.constant 0 : index
    %c192_107 = arith.constant 192 : index
    %156 = vector.load %arg6[%c0_106, %c192_107] : memref<16x600xbf16, #tpu.memory_space<vmem>>, vector<12x384xbf16>
    %cst_108 = arith.constant dense<0.000000e+00> : vector<4x384xf32>
    %157 = tpu.matmul %155, %156, %cst_108 {dimension_numbers = #tpu.dot_dimension_numbers<[1], [0], [0], [1], [0, 0, 1, 1], [], []>} : vector<4x12xbf16>, vector<12x384xbf16>, vector<4x384xf32> -> vector<4x384xf32>
    %158 = arith.addf %153, %157 : vector<4x384xf32>
    %c16 = arith.constant 16 : index
    %c0_109 = arith.constant 0 : index
    %c0_110 = arith.constant 0 : index
    %159 = vector.load %arg3[%c16, %c0_109, %c0_110] : memref<24x4x16xbf16, #tpu.memory_space<vmem>>, vector<1x4x12xbf16>
    %160 = vector.shape_cast %159 : vector<1x4x12xbf16> to vector<4x12xbf16>
    %c0_111 = arith.constant 0 : index
    %c193_112 = arith.constant 193 : index
    %161 = vector.load %arg6[%c0_111, %c193_112] : memref<16x600xbf16, #tpu.memory_space<vmem>>, vector<12x384xbf16>
    %cst_113 = arith.constant dense<0.000000e+00> : vector<4x384xf32>
    %162 = tpu.matmul %160, %161, %cst_113 {dimension_numbers = #tpu.dot_dimension_numbers<[1], [0], [0], [1], [0, 0, 1, 1], [], []>} : vector<4x12xbf16>, vector<12x384xbf16>, vector<4x384xf32> -> vector<4x384xf32>
    %163 = arith.addf %158, %162 : vector<4x384xf32>
    %c17 = arith.constant 17 : index
    %c0_114 = arith.constant 0 : index
    %c0_115 = arith.constant 0 : index
    %164 = vector.load %arg3[%c17, %c0_114, %c0_115] : memref<24x4x16xbf16, #tpu.memory_space<vmem>>, vector<1x4x12xbf16>
    %165 = vector.shape_cast %164 : vector<1x4x12xbf16> to vector<4x12xbf16>
    %c0_116 = arith.constant 0 : index
    %c194_117 = arith.constant 194 : index
    %166 = vector.load %arg6[%c0_116, %c194_117] : memref<16x600xbf16, #tpu.memory_space<vmem>>, vector<12x384xbf16>
    %cst_118 = arith.constant dense<0.000000e+00> : vector<4x384xf32>
    %167 = tpu.matmul %165, %166, %cst_118 {dimension_numbers = #tpu.dot_dimension_numbers<[1], [0], [0], [1], [0, 0, 1, 1], [], []>} : vector<4x12xbf16>, vector<12x384xbf16>, vector<4x384xf32> -> vector<4x384xf32>
    %168 = arith.addf %163, %167 : vector<4x384xf32>
    %c0_119 = arith.constant 0 : index
    %c6_120 = arith.constant 6 : index
    %169 = vector.load %arg4[%c0_119, %c6_120] : memref<4x12xf32, #tpu.memory_space<vmem>>, vector<4x1xf32>
    %c0_121 = arith.constant 0 : index
    %c7_122 = arith.constant 7 : index
    %170 = vector.load %arg4[%c0_121, %c7_122] : memref<4x12xf32, #tpu.memory_space<vmem>>, vector<4x1xf32>
    %c0_123 = arith.constant 0 : index
    %c8_124 = arith.constant 8 : index
    %171 = vector.load %arg4[%c0_123, %c8_124] : memref<4x12xf32, #tpu.memory_space<vmem>>, vector<4x1xf32>
    %172 = vector.broadcast %0 : vector<1x384xf32> to vector<4x384xf32>
    %173 = arith.mulf %168, %172 : vector<4x384xf32>
    %cst_125 = arith.constant dense<0.000000e+00> : vector<4xf32>
    %174 = vector.multi_reduction <add>, %173, %cst_125 [1] : vector<4x384xf32> to vector<4xf32>
    %175 = vector.shape_cast %174 : vector<4xf32> to vector<4x1xf32>
    %cst_126 = arith.constant 3.906250e-03 : f32
    %176 = vector.broadcast %cst_126 : f32 to vector<4x1xf32>
    %177 = arith.mulf %175, %176 : vector<4x1xf32>
    %178 = arith.mulf %173, %173 : vector<4x384xf32>
    %cst_127 = arith.constant dense<0.000000e+00> : vector<4xf32>
    %179 = vector.multi_reduction <add>, %178, %cst_127 [1] : vector<4x384xf32> to vector<4xf32>
    %180 = vector.shape_cast %179 : vector<4xf32> to vector<4x1xf32>
    %cst_128 = arith.constant 3.906250e-03 : f32
    %181 = vector.broadcast %cst_128 : f32 to vector<4x1xf32>
    %182 = arith.mulf %180, %181 : vector<4x1xf32>
    %183 = arith.mulf %177, %177 : vector<4x1xf32>
    %184 = arith.subf %182, %183 : vector<4x1xf32>
    %cst_129 = arith.constant 0.000000e+00 : f32
    %185 = vector.broadcast %cst_129 : f32 to vector<4x1xf32>
    %186 = arith.maximumf %184, %185 : vector<4x1xf32>
    %cst_130 = arith.constant 9.99999974E-6 : f32
    %187 = vector.broadcast %cst_130 : f32 to vector<4x1xf32>
    %188 = arith.addf %186, %187 : vector<4x1xf32>
    %189 = math.rsqrt %188 : vector<4x1xf32>
    %190 = arith.mulf %169, %189 : vector<4x1xf32>
    %191 = arith.mulf %177, %190 : vector<4x1xf32>
    %192 = arith.subf %170, %191 : vector<4x1xf32>
    %193 = vector.broadcast %190 : vector<4x1xf32> to vector<4x384xf32>
    %194 = arith.mulf %168, %193 : vector<4x384xf32>
    %195 = vector.broadcast %192 : vector<4x1xf32> to vector<4x384xf32>
    %196 = arith.addf %194, %195 : vector<4x384xf32>
    %cst_131 = arith.constant 0.000000e+00 : f32
    %197 = vector.broadcast %cst_131 : f32 to vector<4x384xf32>
    %198 = arith.cmpf oge, %196, %197 : vector<4x384xf32>
    %199 = vector.broadcast %171 : vector<4x1xf32> to vector<4x384xf32>
    %200 = arith.mulf %196, %199 : vector<4x384xf32>
    %201 = arith.select %198, %196, %200 : vector<4x384xi1>, vector<4x384xf32>
    %202 = vector.broadcast %0 : vector<1x384xf32> to vector<4x384xf32>
    %203 = arith.mulf %201, %202 : vector<4x384xf32>
    %204 = arith.truncf %203 : vector<4x384xf32> to vector<4x384xbf16>
    %c12_132 = arith.constant 12 : index
    %c193_133 = arith.constant 193 : index
    %205 = vector.load %arg6[%c12_132, %c193_133] : memref<16x600xbf16, #tpu.memory_space<vmem>>, vector<4x384xbf16>
    tpu.vector_store %arg6[%c12_132, %c193_133], %204 {strides = array<i32>} : memref<16x600xbf16, #tpu.memory_space<vmem>>, vector<4x384xbf16>,
    %c18 = arith.constant 18 : index
    %c0_134 = arith.constant 0 : index
    %c0_135 = arith.constant 0 : index
    %206 = vector.load %arg3[%c18, %c0_134, %c0_135] : memref<24x4x16xbf16, #tpu.memory_space<vmem>>, vector<1x4x16xbf16>
    %207 = vector.shape_cast %206 : vector<1x4x16xbf16> to vector<4x16xbf16>
    %c0_136 = arith.constant 0 : index
    %c0_137 = arith.constant 0 : index
    %208 = vector.load %arg6[%c0_136, %c0_137] : memref<16x600xbf16, #tpu.memory_space<vmem>>, vector<16x384xbf16>
    %cst_138 = arith.constant dense<0.000000e+00> : vector<4x384xf32>
    %209 = tpu.matmul %207, %208, %cst_138 {dimension_numbers = #tpu.dot_dimension_numbers<[1], [0], [0], [1], [0, 0, 1, 1], [], []>} : vector<4x16xbf16>, vector<16x384xbf16>, vector<4x384xf32> -> vector<4x384xf32>
    %c19 = arith.constant 19 : index
    %c0_139 = arith.constant 0 : index
    %c0_140 = arith.constant 0 : index
    %210 = vector.load %arg3[%c19, %c0_139, %c0_140] : memref<24x4x16xbf16, #tpu.memory_space<vmem>>, vector<1x4x16xbf16>
    %211 = vector.shape_cast %210 : vector<1x4x16xbf16> to vector<4x16xbf16>
    %c0_141 = arith.constant 0 : index
    %c1_142 = arith.constant 1 : index
    %212 = vector.load %arg6[%c0_141, %c1_142] : memref<16x600xbf16, #tpu.memory_space<vmem>>, vector<16x384xbf16>
    %cst_143 = arith.constant dense<0.000000e+00> : vector<4x384xf32>
    %213 = tpu.matmul %211, %212, %cst_143 {dimension_numbers = #tpu.dot_dimension_numbers<[1], [0], [0], [1], [0, 0, 1, 1], [], []>} : vector<4x16xbf16>, vector<16x384xbf16>, vector<4x384xf32> -> vector<4x384xf32>
    %214 = arith.addf %209, %213 : vector<4x384xf32>
    %c20 = arith.constant 20 : index
    %c0_144 = arith.constant 0 : index
    %c0_145 = arith.constant 0 : index
    %215 = vector.load %arg3[%c20, %c0_144, %c0_145] : memref<24x4x16xbf16, #tpu.memory_space<vmem>>, vector<1x4x16xbf16>
    %216 = vector.shape_cast %215 : vector<1x4x16xbf16> to vector<4x16xbf16>
    %c0_146 = arith.constant 0 : index
    %c2_147 = arith.constant 2 : index
    %217 = vector.load %arg6[%c0_146, %c2_147] : memref<16x600xbf16, #tpu.memory_space<vmem>>, vector<16x384xbf16>
    %cst_148 = arith.constant dense<0.000000e+00> : vector<4x384xf32>
    %218 = tpu.matmul %216, %217, %cst_148 {dimension_numbers = #tpu.dot_dimension_numbers<[1], [0], [0], [1], [0, 0, 1, 1], [], []>} : vector<4x16xbf16>, vector<16x384xbf16>, vector<4x384xf32> -> vector<4x384xf32>
    %219 = arith.addf %214, %218 : vector<4x384xf32>
    %c21 = arith.constant 21 : index
    %c0_149 = arith.constant 0 : index
    %c0_150 = arith.constant 0 : index
    %220 = vector.load %arg3[%c21, %c0_149, %c0_150] : memref<24x4x16xbf16, #tpu.memory_space<vmem>>, vector<1x4x16xbf16>
    %221 = vector.shape_cast %220 : vector<1x4x16xbf16> to vector<4x16xbf16>
    %c0_151 = arith.constant 0 : index
    %c192_152 = arith.constant 192 : index
    %222 = vector.load %arg6[%c0_151, %c192_152] : memref<16x600xbf16, #tpu.memory_space<vmem>>, vector<16x384xbf16>
    %cst_153 = arith.constant dense<0.000000e+00> : vector<4x384xf32>
    %223 = tpu.matmul %221, %222, %cst_153 {dimension_numbers = #tpu.dot_dimension_numbers<[1], [0], [0], [1], [0, 0, 1, 1], [], []>} : vector<4x16xbf16>, vector<16x384xbf16>, vector<4x384xf32> -> vector<4x384xf32>
    %224 = arith.addf %219, %223 : vector<4x384xf32>
    %c22 = arith.constant 22 : index
    %c0_154 = arith.constant 0 : index
    %c0_155 = arith.constant 0 : index
    %225 = vector.load %arg3[%c22, %c0_154, %c0_155] : memref<24x4x16xbf16, #tpu.memory_space<vmem>>, vector<1x4x16xbf16>
    %226 = vector.shape_cast %225 : vector<1x4x16xbf16> to vector<4x16xbf16>
    %c0_156 = arith.constant 0 : index
    %c193_157 = arith.constant 193 : index
    %227 = vector.load %arg6[%c0_156, %c193_157] : memref<16x600xbf16, #tpu.memory_space<vmem>>, vector<16x384xbf16>
    %cst_158 = arith.constant dense<0.000000e+00> : vector<4x384xf32>
    %228 = tpu.matmul %226, %227, %cst_158 {dimension_numbers = #tpu.dot_dimension_numbers<[1], [0], [0], [1], [0, 0, 1, 1], [], []>} : vector<4x16xbf16>, vector<16x384xbf16>, vector<4x384xf32> -> vector<4x384xf32>
    %229 = arith.addf %224, %228 : vector<4x384xf32>
    %c23 = arith.constant 23 : index
    %c0_159 = arith.constant 0 : index
    %c0_160 = arith.constant 0 : index
    %230 = vector.load %arg3[%c23, %c0_159, %c0_160] : memref<24x4x16xbf16, #tpu.memory_space<vmem>>, vector<1x4x16xbf16>
    %231 = vector.shape_cast %230 : vector<1x4x16xbf16> to vector<4x16xbf16>
    %c0_161 = arith.constant 0 : index
    %c194_162 = arith.constant 194 : index
    %232 = vector.load %arg6[%c0_161, %c194_162] : memref<16x600xbf16, #tpu.memory_space<vmem>>, vector<16x384xbf16>
    %cst_163 = arith.constant dense<0.000000e+00> : vector<4x384xf32>
    %233 = tpu.matmul %231, %232, %cst_163 {dimension_numbers = #tpu.dot_dimension_numbers<[1], [0], [0], [1], [0, 0, 1, 1], [], []>} : vector<4x16xbf16>, vector<16x384xbf16>, vector<4x384xf32> -> vector<4x384xf32>
    %234 = arith.addf %229, %233 : vector<4x384xf32>
    %c0_164 = arith.constant 0 : index
    %c9_165 = arith.constant 9 : index
    %235 = vector.load %arg4[%c0_164, %c9_165] : memref<4x12xf32, #tpu.memory_space<vmem>>, vector<4x1xf32>
    %c0_166 = arith.constant 0 : index
    %c10_167 = arith.constant 10 : index
    %236 = vector.load %arg4[%c0_166, %c10_167] : memref<4x12xf32, #tpu.memory_space<vmem>>, vector<4x1xf32>
    %c0_168 = arith.constant 0 : index
    %c11_169 = arith.constant 11 : index
    %237 = vector.load %arg4[%c0_168, %c11_169] : memref<4x12xf32, #tpu.memory_space<vmem>>, vector<4x1xf32>
    %238 = vector.broadcast %0 : vector<1x384xf32> to vector<4x384xf32>
    %239 = arith.mulf %234, %238 : vector<4x384xf32>
    %cst_170 = arith.constant dense<0.000000e+00> : vector<4xf32>
    %240 = vector.multi_reduction <add>, %239, %cst_170 [1] : vector<4x384xf32> to vector<4xf32>
    %241 = vector.shape_cast %240 : vector<4xf32> to vector<4x1xf32>
    %cst_171 = arith.constant 3.906250e-03 : f32
    %242 = vector.broadcast %cst_171 : f32 to vector<4x1xf32>
    %243 = arith.mulf %241, %242 : vector<4x1xf32>
    %244 = arith.mulf %239, %239 : vector<4x384xf32>
    %cst_172 = arith.constant dense<0.000000e+00> : vector<4xf32>
    %245 = vector.multi_reduction <add>, %244, %cst_172 [1] : vector<4x384xf32> to vector<4xf32>
    %246 = vector.shape_cast %245 : vector<4xf32> to vector<4x1xf32>
    %cst_173 = arith.constant 3.906250e-03 : f32
    %247 = vector.broadcast %cst_173 : f32 to vector<4x1xf32>
    %248 = arith.mulf %246, %247 : vector<4x1xf32>
    %249 = arith.mulf %243, %243 : vector<4x1xf32>
    %250 = arith.subf %248, %249 : vector<4x1xf32>
    %cst_174 = arith.constant 0.000000e+00 : f32
    %251 = vector.broadcast %cst_174 : f32 to vector<4x1xf32>
    %252 = arith.maximumf %250, %251 : vector<4x1xf32>
    %cst_175 = arith.constant 9.99999974E-6 : f32
    %253 = vector.broadcast %cst_175 : f32 to vector<4x1xf32>
    %254 = arith.addf %252, %253 : vector<4x1xf32>
    %255 = math.rsqrt %254 : vector<4x1xf32>
    %256 = arith.mulf %235, %255 : vector<4x1xf32>
    %257 = arith.mulf %243, %256 : vector<4x1xf32>
    %258 = arith.subf %236, %257 : vector<4x1xf32>
    %259 = vector.broadcast %256 : vector<4x1xf32> to vector<4x384xf32>
    %260 = arith.mulf %234, %259 : vector<4x384xf32>
    %261 = vector.broadcast %258 : vector<4x1xf32> to vector<4x384xf32>
    %262 = arith.addf %260, %261 : vector<4x384xf32>
    %cst_176 = arith.constant 0.000000e+00 : f32
    %263 = vector.broadcast %cst_176 : f32 to vector<4x384xf32>
    %264 = arith.cmpf oge, %262, %263 : vector<4x384xf32>
    %265 = vector.broadcast %237 : vector<4x1xf32> to vector<4x384xf32>
    %266 = arith.mulf %262, %265 : vector<4x384xf32>
    %267 = arith.select %264, %262, %266 : vector<4x384xi1>, vector<4x384xf32>
    %c0_177 = arith.constant 0 : index
    %c0_178 = arith.constant 0 : index
    %c0_179 = arith.constant 0 : index
    %268 = vector.load %arg5[%c0_177, %c0_178, %c0_179] : memref<1x4x384xf32, #tpu.memory_space<vmem>>, vector<1x4x384xf32>
    %269 = vector.shape_cast %268 : vector<1x4x384xf32> to vector<4x384xf32>
    %270 = vector.shape_cast %267 : vector<4x384xf32> to vector<1x4x384xf32>
    tpu.vector_store %arg5[%c0_177, %c0_178, %c0_179], %270 {strides = array<i32>} : memref<1x4x384xf32, #tpu.memory_space<vmem>>, vector<1x4x384xf32>,
    return
  }
  func.func @transform_0(%arg0: i32) -> (i32, i32, i32) {
    %c0_i32 = arith.constant 0 : i32
    %c0_i32_0 = arith.constant 0 : i32
    %c0_i32_1 = arith.constant 0 : i32
    return %arg0, %c0_i32, %c0_i32_0 : i32, i32, i32
  }
  func.func @transform_1(%arg0: i32) -> (i32, i32) {
    %c0_i32 = arith.constant 0 : i32
    %c0_i32_0 = arith.constant 0 : i32
    %c0_i32_1 = arith.constant 0 : i32
    return %c0_i32, %c0_i32_0 : i32, i32
  }
  func.func @transform_2(%arg0: i32) -> (i32, i32, i32) {
    %c0_i32 = arith.constant 0 : i32
    %c0_i32_0 = arith.constant 0 : i32
    %c0_i32_1 = arith.constant 0 : i32
    %c0_i32_2 = arith.constant 0 : i32
    return %c0_i32, %c0_i32_0, %c0_i32_1 : i32, i32, i32
  }
  func.func @transform_3(%arg0: i32) -> (i32, i32) {
    %c0_i32 = arith.constant 0 : i32
    %c0_i32_0 = arith.constant 0 : i32
    %c0_i32_1 = arith.constant 0 : i32
    return %c0_i32, %c0_i32_0 : i32, i32
  }
  func.func @transform_4(%arg0: i32) -> (i32, i32, i32) {
    %c0_i32 = arith.constant 0 : i32
    %c0_i32_0 = arith.constant 0 : i32
    %c0_i32_1 = arith.constant 0 : i32
    return %arg0, %c0_i32, %c0_i32_0 : i32, i32, i32
  }
}

</mosaic_0001>

<bundles_post_ra>
// kernel: tpu_custom_call.1
= control target key start
LH: loop header
LB: loop body
LE: loop exit
PB: predicated region body
PF: predicated region fallthrough
CT: control target
= control target key end

     0   :  { %9 = vsyncpa [#allocation4], 0  ;;  %s3317_s0 = inlined_call_operand.vmem [shape: bf16[2,4,384], index: 0, kind: input, shape index: {}]   ;;  %s3318_s1 = inlined_call_operand.vmem [shape: f32[1,384], index: 1, kind: input, shape index: {}]   ;;  %s3319_s2 = inlined_call_operand.vmem [shape: bf16[24,4,16], index: 2, kind: input, shape index: {}]   ;;  %s3320_s3 = inlined_call_operand.vmem [shape: f32[4,12], index: 3, kind: input, shape index: {}]   ;;  %s3321_s4 = inlined_call_operand.hbm [shape: f32[2,4,384], index: 4, kind: output, shape index: {}]  }
   0x1   :  { %11 = vsyncpa [#allocation4 + $0x1], 0  ;;  %s2756_s15 = smov 0   ;;  %s2758_s16 = smov 0  }
   0x2   :  { %s2760_s17 = smov 0   ;;  %s2762_s18 = smov 0  }
   0x3 LB: > { %s2777_s19 = sadd.s32 4294967295, %s2701_s18   ;;  %s2360_s20 = sadd.s32 4294967294, %s2701_s18   ;;  %s2701_s18 = sphi %s2762_s18, %s3331_s18   ;;  %s2697_s17 = sphi %s2760_s17, %s3330_s17   ;;  %s2693_s16 = sphi %s2758_s16, %s3329_s16   ;;  %s2689_s15 = sphi %s2756_s15, %s3328_s15  }
   0x4   : > { %s2781_s21 = sadd.s32 1, %s2701_s18   ;;  %s113_s22 = sadd.s32 1, %s2697_s17 }
   0x5   : > { %s110_s23 = ssub.s32 %s2701_s18, %s2781_s21  ;;  %p123_p0 = scmp.ne.s32.totalorder %s2697_s17, %s2693_s16 }
   0x6   : > { %p111_p1 = scmp.eq.s32.totalorder %s110_s23, 0  ;;  %p124_p2 = scmp.eq.s32.totalorder %s2777_s19, 1 }
   0x7   : > { %p129_p3 = scmp.ne.s32.totalorder %s2693_s16, %s2689_s15  ;;  %p130_p4 = scmp.eq.s32.totalorder %s2360_s20, 1 }
   0x8   : > { %s2792_s24 = scalar_select %p111_p1, %s2697_s17, %s113_s22  }
   0x9   : > { %p2794_p5 = por %p124_p2, %p123_p0  ;;  %p2798_p6 = por %p130_p4, %p129_p3 }
   0xa   : > { %p2363_p7 = scmp.ge.s32.totalorder %s2701_s18, 1  ;;  %p165_p8 = scmp.lt.s32.totalorder %s2701_s18, 3 }
   0xc   : > { %p166_p9 = pnand %p2363_p7, %p165_p8 }
   0xd   : > { %p191_p10 = scmp.lt.s32.totalorder (!%p166_p9), %s2777_s19, 1  ;;  %s2704_s6 = smov (!%p166_p9), 64  }
   0xe   : > { %169 = sbr.rel (%p166_p9) target bundleno = 3344 (0xd10), region = 36  ;;  %s2705_s7 = smov (!%p166_p9), 88  }
   0xf   : > { %s2706_s8 = smov (!%p166_p9), 87   ;;  %s2707_s9 = smov (!%p166_p9), 86  }
  0x10   : > { %s2708_s10 = smov (!%p166_p9), 63   ;;  %s2709_s11 = smov (!%p166_p9), 62  }
  0x11   : > { %s2710_s14 = smov (!%p166_p9), 1   ;;  %s2713_s20 = smov (!%p166_p9), 65  }
  0x12   : > { %s2714_s22 = smov (!%p166_p9), 111   ;;  %s2715_s23 = smov (!%p166_p9), 112  }
  0x13   : > { %vm198_vm0 = vcmask 1043456   ;;  %vm199_vm1 = vcmask 719876   ;;  %v2703_v0 = vmov 0   ;;  %s192_s27 = scalar_select %p191_p10, %s2777_s19, 1  ;;  %vm203_vm3 = vcmask 716288  }
  0x14   : > { %vm200_vm2 = vmor %vm199_vm1, %vm198_vm0  ;;  %2618 = vset.pattern.permute.xlu1 %v2703_v0  ;;  %204 = vst.msk [vmem:[#allocation2 + $0x10] sm:$0xf] %vm203_vm3, %v2703_v0  ;;  %vm226_vm4 = vcmask 1041920   ;;  %vm227_vm5 = vcmask 1045508   ;;  %vm219_vm6 = vcmask 523264   ;;  %vm230_vm8 = vcmask 1041408  }
  0x15   : > { %201 = vst.msk [vmem:[#allocation2] sm:$0xff] %vm200_vm2, %v2703_v0  ;;  %s2549_s28 = smul.u32 6, %s192_s27  ;;  %vm228_vm7 = vmor %vm227_vm5, %vm226_vm4  ;;  %vm231_vm9 = vcmask 521220   ;;  %vm257_vm11 = vcmask 711680   ;;  %v2365_v25 = vld [vmem:[%s3319_s2 + $0x2] sm:$0x3] }
  0x16   : > { %202 = vst.msk [vmem:[#allocation2 + $0x14] sm:$0xff] %vm200_vm2, %v2703_v0  ;;  %vm232_vm10 = vmor %vm231_vm9, %vm230_vm8  ;;  %vm261_vm12 = vcmask 31744   ;;  %vm321_vm13 = vcmask 719872   ;;  %vm386_vm14 = vcmask 703488   ;;  %v234_v47 = vld [vmem:[%s3319_s2] sm:$0x3] }
  0x17   : > { %s195_s5 = scalar_lea.vmem %s3317_s0, %s2549_s28  ;;  %205 = vst.msk [vmem:[#allocation2 + $0x24] sm:$0xf] %vm203_vm3, %v2703_v0  ;;  %v2372_v54 = vld [vmem:[%s3319_s2 + $0x4] sm:$0x3]  ;;  %vm521_vm15 = vcmask 515072   ;;  %vm589_vm1 = vcmask 506880  }
  0x18   : > { %v206_v1 = vld [vmem:[%s195_s5] sm:$0x3f]  ;;  %s2716_s27 = smov 110   ;;  %s2720_s30 = smov 31  }
  0x19   : > { %208 = vst [vmem:[#allocation1] ss:$2 sm:$0xff] %v206_v1  ;;  %s2721_s5 = smov 32   ;;  %s2726_s12 = smov 127  }
  0x1a   : > { %s2727_s13 = smov 126  }
  0x20   : > { %v209_v2 = vld.sshfl [vmem:[#allocation1] sm:$0xff pattern:$0x75643120]  ;;  %v211_v3 = vld.sshfl [vmem:[#allocation1 + $0x8] sm:$0xff pattern:$0x75643120] }
  0x21   : > { %213 = vrot.lane.b32.xlu0 %v209_v2, %s2704_s6 }
  0x29   : > { %215 = vrot.lane.b32.xlu0 %v211_v3, %s2704_s6 }
  0x93   : > { %v214_v4 = vpop.permute.xlu0 %213 }
  0x94   : > { %v217_v5 = vrot.slane %v214_v4, 4 }
  0x96   : > { %v220_v6 = vsel %vm219_vm6, %v217_v5, %v214_v4 }
  0x97   : > { %229 = vst.msk [vmem:[#allocation2 + $0x4] sm:$0x33] %vm228_vm7, %v220_v6 }
  0x9b   : > { %v216_v7 = vpop.permute.xlu0 %215 }
  0x9c   : > { %v218_v8 = vrot.slane %v216_v7, 4 }
  0x9e   : > { %v222_v9 = vsel %vm198_vm0, %v217_v5, %v218_v8  ;;  %v235_v10 = vld [vmem:[#allocation2 + $0x4] sm:$0x33]  ;;  %v2376_v5 = vld [vmem:[%s3319_s2 + $0x6] sm:$0x3] }
  0x9f   : > { %v223_v11 = vsel %vm219_vm6, %v222_v9, %v216_v7  ;;  %v241_v12 = vunpack.c.l.b16 %v235_v10  ;;  %v242_v14 = vunpack.c.h.b16 %v235_v10 }
  0xa0   : > { %233 = vst.msk [vmem:[#allocation2 + $0xc] sm:$0x33] %vm232_vm10, %v223_v11 }
  0xa1   : > { %v245_v13 = vpack.c.b16 %v241_v12, %v241_v12  ;;  %v246_v18 = vpack.c.b16 %v242_v14, %v242_v14 }
  0xa3   : > { %313 = vrot.lane.b32.xlu0 %v245_v13, %s2705_s7  ;;  %249 = vrot.lane.b32.xlu1 %v245_v13, %s2706_s8 }
  0xa7   : > { %v236_v15 = vld [vmem:[#allocation2 + $0xc] sm:$0x33] }
  0xa8   : > { %v244_v16 = vunpack.c.h.b16 %v236_v15  ;;  %v243_v17 = vunpack.c.l.b16 %v236_v15 }
  0xaa   : > { %v248_v19 = vpack.c.b16 %v244_v16, %v244_v16  ;;  %v247_v20 = vpack.c.b16 %v243_v17, %v243_v17 }
  0xab   : > { %251 = vrot.lane.b32.xlu1 %v246_v18, %s2706_s8 }
  0xac   : > { %319 = vrot.lane.b32.xlu0 %v248_v19, %s2705_s7  ;;  %253 = vrot.lane.b32.xlu2 %v247_v20, %s2706_s8 }
  0xb3   : > { %315 = vrot.lane.b32.xlu1 %v246_v18, %s2705_s7 }
  0xb4   : > { %382 = vrot.lane.b32.xlu0 %v247_v20, %s2707_s9  ;;  %255 = vrot.lane.b32.xlu2 %v248_v19, %s2706_s8 }
  0xbb   : > { %378 = vrot.lane.b32.xlu1 %v245_v13, %s2707_s9 }
  0xbc   : > { %448 = vrot.lane.b32.xlu0 %v246_v18, %s2704_s6  ;;  %317 = vrot.lane.b32.xlu2 %v247_v20, %s2705_s7  ;;  %s2722_s7 = smov 30  }
  0xc3   : > { %384 = vrot.lane.b32.xlu1 %v248_v19, %s2707_s9 }
  0xc4   : > { %513 = vrot.lane.b32.xlu0 %v245_v13, %s2708_s10  ;;  %380 = vrot.lane.b32.xlu2 %v246_v18, %s2707_s9 }
  0xcb   : > { %450 = vrot.lane.b32.xlu1 %v247_v20, %s2704_s6 }
  0xcc   : > { %519 = vrot.lane.b32.xlu0 %v248_v19, %s2708_s10  ;;  %446 = vrot.lane.b32.xlu2 %v245_v13, %s2704_s6 }
  0xd3   : > { %515 = vrot.lane.b32.xlu1 %v246_v18, %s2708_s10 }
  0xd4   : > { %585 = vrot.lane.b32.xlu0 %v247_v20, %s2709_s11  ;;  %452 = vrot.lane.b32.xlu2 %v248_v19, %s2704_s6 }
  0xdb   : > { %581 = vrot.lane.b32.xlu1 %v245_v13, %s2709_s11 }
  0xdc   : > { %517 = vrot.lane.b32.xlu2 %v247_v20, %s2708_s10 }
  0xe3   : > { %587 = vrot.lane.b32.xlu1 %v248_v19, %s2709_s11 }
  0xe4   : > { %583 = vrot.lane.b32.xlu2 %v246_v18, %s2709_s11  ;;  %v2380_v18 = vld [vmem:[%s3319_s2 + $0x8] sm:$0x3] }
 0x106   : > { %v254_v21 = vpop.permute.xlu2 %253 }
 0x10e   : > { %v256_v22 = vpop.permute.xlu2 %255 }
 0x10f   : > { %v260_v23 = vsel %vm257_vm11, %v254_v21, %v256_v22  ;;  %v2384_v22 = vld [vmem:[%s3319_s2 + $0xa] sm:$0x3] }
 0x110   : > { %v272_v24 = vsel %vm230_vm8, %v260_v23, 0 }
 0x111   : > { %307 = vmatpush.bf16.msra.mxu2 %v272_v24 }
 0x114   : > { %2368 = vmatmul.msk.bf16.vlgmr.msra.gmra.mxu2 %vm261_vm12, %v2365_v25 }
 0x115   : > { %v250_v26 = vpop.permute.xlu1 %249  ;;  %v314_v27 = vpop.permute.xlu0 %313 }
 0x116   : > { %v318_v28 = vpop.permute.xlu2 %317 }
 0x11d   : > { %v252_v29 = vpop.permute.xlu1 %251 }
 0x11e   : > { %v381_v30 = vpop.permute.xlu2 %380  ;;  %v320_v31 = vpop.permute.xlu0 %319  ;;  %v258_v32 = vsel %vm257_vm11, %v250_v26, %v252_v29  ;;  %v259_v33 = vsel %vm257_vm11, %v252_v29, %v254_v21  ;;  %vm749_vm11 = vcmask 1043978  }
 0x11f   : > { %v266_v34 = vsel %vm230_vm8, %v258_v32, 0  ;;  %v269_v35 = vsel %vm230_vm8, %v259_v33, 0  ;;  %v324_v36 = vsel %vm321_vm13, %v318_v28, %v320_v31 }
 0x120   : > { %281 = vmatpush.bf16.msra.mxu0 %v266_v34  ;;  %294 = vmatpush.bf16.msra.mxu1 %v269_v35  ;;  %v335_v37 = vsel %vm230_vm8, %v324_v36, 0 }
 0x123   : > { %2366 = vmatmul.msk.bf16.vlgmr.msra.gmra.mxu0 %vm261_vm12, %v2365_v25  ;;  %2367 = vmatmul.msk.bf16.vlgmr.msra.gmra.mxu1 %vm261_vm12, %v2365_v25 }
 0x124   : > { %370 = vmatpush.bf16.msrb.mxu1 %v335_v37 }
 0x125   : > { %v316_v38 = vpop.permute.xlu1 %315 }
 0x126   : > { %v383_v39 = vpop.permute.xlu0 %382  ;;  %v322_v40 = vsel %vm321_vm13, %v314_v27, %v316_v38  ;;  %v323_v41 = vsel %vm321_vm13, %v316_v38, %v318_v28  ;;  %v447_v45 = vpop.permute.xlu2 %446  ;;  %vm753_vm13 = vcmask 1043458  }
 0x127   : > { %v329_v42 = vsel %vm230_vm8, %v322_v40, 0  ;;  %v332_v43 = vsel %vm230_vm8, %v323_v41, 0  ;;  %v388_v44 = vsel %vm386_vm14, %v381_v30, %v383_v39 }
 0x128   : > { %344 = vmatpush.bf16.msra.mxu3 %v329_v42  ;;  %357 = vmatpush.bf16.msrb.mxu0 %v332_v43  ;;  %v397_v46 = vsel %vm230_vm8, %v388_v44, 0 }
 0x12b   : > { %2369 = vmatmul.msk.bf16.vlgmr.msra.gmra.mxu3 %vm261_vm12, %v234_v47 }
 0x12c   : > { %422 = vmatpush.bf16.msrb.mxu3 %v397_v46 }
 0x12d   : > { %v379_v48 = vpop.permute.xlu1 %378 }
 0x12e   : > { %v449_v49 = vpop.permute.xlu0 %448  ;;  %v387_v50 = vsel %vm386_vm14, %v379_v48, %v381_v30  ;;  %v453_v55 = vpop.permute.xlu2 %452 }
 0x12f   : > { %v454_v51 = vsel %vm219_vm6, %v447_v45, %v449_v49  ;;  %v394_v52 = vsel %vm230_vm8, %v387_v50, 0 }
 0x130   : > { %v461_v53 = vsel %vm230_vm8, %v454_v51, 0  ;;  %409 = vmatpush.bf16.msrb.mxu2 %v394_v52 }
 0x131   : > { %476 = vmatpush.bf16.msra.mxu1 %v461_v53 }
 0x133   : > { %2370 = vmatmul.msk.bf16.vlgmr.msrb.gmra.mxu0 %vm261_vm12, %v234_v47  ;;  %2371 = vmatmul.msk.bf16.vlgmr.msrb.gmra.mxu1 %vm261_vm12, %v234_v47 }
 0x134   : > { %2373 = vmatmul.msk.bf16.vlgmr.msrb.gmra.mxu2 %vm261_vm12, %v2372_v54 }
 0x135   : > { %v385_v56 = vpop.permute.xlu1 %384 }
 0x136   : > { %v389_v57 = vsel %vm386_vm14, %v383_v39, %v385_v56  ;;  %v514_v58 = vpop.permute.xlu0 %513  ;;  %v518_v60 = vpop.permute.xlu2 %517  ;;  %v197_v56 = vld [vmem:[%s3318_s1] sm:$0x7]  ;;  %vm754_vm14 = vcmask 531462  }
 0x137   : > { %v400_v59 = vsel %vm230_vm8, %v389_v57, 0 }
 0x138   : > { %435 = vmatpush.bf16.msra.mxu0 %v400_v59 }
 0x13b   : > { %2374 = vmatmul.msk.bf16.vlgmr.msrb.gmra.mxu3 %vm261_vm12, %v2372_v54 }
 0x13d   : > { %v451_v61 = vpop.permute.xlu1 %450 }
 0x13e   : > { %v455_v62 = vsel %vm219_vm6, %v449_v49, %v451_v61  ;;  %v456_v63 = vsel %vm219_vm6, %v451_v61, %v453_v55  ;;  %v520_v0 = vpop.permute.xlu0 %519  ;;  %v584_v7 = vpop.permute.xlu2 %583 }
 0x13f   : > { %v464_v1 = vsel %vm230_vm8, %v455_v62, 0  ;;  %v467_v2 = vsel %vm230_vm8, %v456_v63, 0  ;;  %v524_v3 = vsel %vm521_vm15, %v518_v60, %v520_v0  ;;  %v2904_v63 = vperm.slane %v197_v56, 0 }
 0x140   : > { %v535_v4 = vsel %vm230_vm8, %v524_v3, 0  ;;  %489 = vmatpush.bf16.msra.mxu2 %v464_v1  ;;  %502 = vmatpush.bf16.msra.mxu3 %v467_v2  ;;  %v2906_v1 = vperm.slane %v197_v56, 1 }
 0x143   : > { %2375 = vmatmul.msk.bf16.vlgmr.msra.gmra.mxu0 %vm261_vm12, %v2372_v54  ;;  %2377 = vmatmul.msk.bf16.vlgmr.msra.gmra.mxu1 %vm261_vm12, %v2376_v5 }
 0x144   : > { %570 = vmatpush.bf16.msrb.mxu2 %v535_v4 }
 0x145   : > { %2378 = vmatmul.msk.bf16.vlgmr.msra.gmra.mxu2 %vm261_vm12, %v2376_v5  ;;  %v516_v6 = vpop.permute.xlu1 %515 }
 0x146   : > { %v522_v8 = vsel %vm521_vm15, %v514_v58, %v516_v6  ;;  %v523_v9 = vsel %vm521_vm15, %v516_v6, %v518_v60  ;;  %v586_v10 = vpop.permute.xlu0 %585  ;;  %v2910_v6 = vperm.slane %v197_v56, 2 }
 0x147   : > { %v529_v11 = vsel %vm230_vm8, %v522_v8, 0  ;;  %v532_v12 = vsel %vm230_vm8, %v523_v9, 0  ;;  %v591_v13 = vsel %vm589_vm1, %v584_v7, %v586_v10 }
 0x148   : > { %v600_v14 = vsel %vm230_vm8, %v591_v13, 0  ;;  %544 = vmatpush.bf16.msrb.mxu0 %v529_v11  ;;  %557 = vmatpush.bf16.msrb.mxu1 %v532_v12 }
 0x14b   : > { %2379 = vmatmul.msk.bf16.vlgmr.msra.gmra.mxu3 %vm261_vm12, %v2376_v5 }
 0x14c   : > { %625 = vmatpush.bf16.msra.mxu0 %v600_v14 }
 0x14d   : > { %v582_v15 = vpop.permute.xlu1 %581 }
 0x14e   : > { %v590_v16 = vsel %vm589_vm1, %v582_v15, %v584_v7 }
 0x14f   : > { %v597_v17 = vsel %vm230_vm8, %v590_v16, 0 }
 0x150   : > { %612 = vmatpush.bf16.msrb.mxu3 %v597_v17 }
 0x153   : > { %2381 = vmatmul.msk.bf16.vlgmr.msrb.gmra.mxu0 %vm261_vm12, %v2380_v18  ;;  %2382 = vmatmul.msk.bf16.vlgmr.msrb.gmra.mxu1 %vm261_vm12, %v2380_v18 }
 0x155   : > { %2383 = vmatmul.msk.bf16.vlgmr.msrb.gmra.mxu2 %vm261_vm12, %v2380_v18  ;;  %v588_v19 = vpop.permute.xlu1 %587 }
 0x156   : > { %v592_v20 = vsel %vm589_vm1, %v586_v10, %v588_v19 }
 0x157   : > { %v603_v21 = vsel %vm230_vm8, %v592_v20, 0 }
 0x158   : > { %638 = vmatpush.bf16.msra.mxu1 %v603_v21 }
 0x15b   : > { %2385 = vmatmul.msk.bf16.vlgmr.msrb.gmra.mxu3 %vm261_vm12, %v2384_v22 }
 0x163   : > { %2386 = vmatmul.msk.bf16.vlgmr.msra.gmra.mxu0 %vm261_vm12, %v2384_v22  ;;  %2387 = vmatmul.msk.bf16.vlgmr.msra.gmra.mxu1 %vm261_vm12, %v2384_v22  ;;  %vm750_vm12 = vcmask 1047558  }
 0x197   : > { %v309_v23 = vpop.f32.mrf.mxu2 }
 0x19f   : > { %v311_v24 = vpop.f32.mrf.mxu2 }
 0x1a0   : > { %v283_v25 = vpop.f32.mrf.mxu0  ;;  %v296_v26 = vpop.f32.mrf.mxu1 }
 0x1a8   : > { %v285_v27 = vpop.f32.mrf.mxu0  ;;  %v298_v28 = vpop.f32.mrf.mxu1 }
 0x1ae   : > { %v346_v29 = vpop.f32.mrf.mxu3 }
 0x1af   : > { %v347_v49 = vadd.f32 %v346_v29, %v283_v25 }
 0x1b0   : > { %v359_v30 = vpop.f32.mrf.mxu0  ;;  %v372_v31 = vpop.f32.mrf.mxu1 }
 0x1b1   : > { %v360_v53 = vadd.f32 %v359_v30, %v296_v26  ;;  %v373_v54 = vadd.f32 %v372_v31, %v309_v23 }
 0x1b6   : > { %v348_v32 = vpop.f32.mrf.mxu3 }
 0x1b7   : > { %v411_v33 = vpop.f32.mrf.mxu2 }
 0x1b8   : > { %v361_v34 = vpop.f32.mrf.mxu0  ;;  %v374_v35 = vpop.f32.mrf.mxu1  ;;  %v441_v55 = vadd.f32 %v411_v33, %v347_v49 }
 0x1be   : > { %v424_v36 = vpop.f32.mrf.mxu3 }
 0x1bf   : > { %v413_v37 = vpop.f32.mrf.mxu2  ;;  %v442_v57 = vadd.f32 %v424_v36, %v360_v53 }
 0x1c0   : > { %v437_v38 = vpop.f32.mrf.mxu0  ;;  %v478_v39 = vpop.f32.mrf.mxu1 }
 0x1c1   : > { %v443_v58 = vadd.f32 %v437_v38, %v373_v54  ;;  %v508_v59 = vadd.f32 %v478_v39, %v441_v55 }
 0x1c6   : > { %v426_v40 = vpop.f32.mrf.mxu3 }
 0x1c8   : > { %v491_v41 = vpop.f32.mrf.mxu2  ;;  %v439_v42 = vpop.f32.mrf.mxu0 }
 0x1c9   : > { %v480_v43 = vpop.f32.mrf.mxu1  ;;  %v509_v60 = vadd.f32 %v491_v41, %v442_v57 }
 0x1ca   : > { %v647_v43 = vld [vmem:[%s3320_s3] sm:$0xf] }
 0x1ce   : > { %v504_v44 = vpop.f32.mrf.mxu3 }
 0x1cf   : > { %v510_v61 = vadd.f32 %v504_v44, %v443_v58 }
 0x1d0   : > { %v493_v45 = vpop.f32.mrf.mxu2  ;;  %v546_v46 = vpop.f32.mrf.mxu0 }
 0x1d1   : > { %v559_v47 = vpop.f32.mrf.mxu1  ;;  %v576_v62 = vadd.f32 %v546_v46, %v508_v59 }
 0x1d2   : > { %v577_v2 = vadd.f32 %v559_v47, %v509_v60 }
 0x1d6   : > { %v506_v48 = vpop.f32.mrf.mxu3 }
 0x1d7   : > { %v2711_v48 = vmov 1  }
 0x1d8   : > { %v572_v50 = vpop.f32.mrf.mxu2  ;;  %v548_v51 = vpop.f32.mrf.mxu0 }
 0x1d9   : > { %v561_v52 = vpop.f32.mrf.mxu1  ;;  %v578_v3 = vadd.f32 %v572_v50, %v510_v61  ;;  %v2712_v51 = vmov 2  }
 0x1de   : > { %v614_v0 = vpop.f32.mrf.mxu3 }
 0x1df   : > { %v2908_v4 = vadd.f32 %v614_v0, %v576_v62 }
 0x1e0   : > { %v574_v5 = vpop.f32.mrf.mxu2  ;;  %v627_v7 = vpop.f32.mrf.mxu0 }
 0x1e1   : > { %v640_v8 = vpop.f32.mrf.mxu1  ;;  %v655_v9 = vmul.f32 %v2904_v63, %v2908_v4  ;;  %v645_v10 = vadd.f32 %v627_v7, %v577_v2 }
 0x1e2   : > { %v646_v11 = vadd.f32 %v640_v8, %v578_v3 }
 0x1e3   : > { %v666_v12 = vmul.f32 %v655_v9, %v655_v9  ;;  %v656_v13 = vmul.f32 %v2906_v1, %v645_v10  ;;  %v658_v16 = vsel %vm198_vm0, %v655_v9, 0.0 }
 0x1e4   : > { %v657_v14 = vmul.f32 %v2910_v6, %v646_v11 }
 0x1e5   : > { %v667_v15 = vmul.f32 %v656_v13, %v656_v13  ;;  %v659_v17 = vsel %vm198_vm0, %v656_v13, 0.0  ;;  %v669_v22 = vsel %vm198_vm0, %v666_v12, 0.0 }
 0x1e6   : > { %v668_v18 = vmul.f32 %v657_v14, %v657_v14  ;;  %v616_v19 = vpop.f32.mrf.mxu3  ;;  %v660_v20 = vadd.f32 %v659_v17, %v658_v16  ;;  %v661_v21 = vsel %vm198_vm0, %v657_v14, 0.0 }
 0x1e7   : > { %v670_v23 = vsel %vm198_vm0, %v667_v15, 0.0 }
 0x1e8   : > { %v629_v24 = vpop.f32.mrf.mxu0  ;;  %v662_v26 = vadd.f32 %v661_v21, %v660_v20  ;;  %v671_v27 = vadd.f32 %v670_v23, %v669_v22  ;;  %v672_v28 = vsel %vm198_vm0, %v668_v18, 0.0 }
 0x1e9   : > { %v642_v25 = vpop.f32.mrf.mxu1 }
 0x1ea   : > { %663 = vadd.xlane.f32.xlu2 %v662_v26  ;;  %v673_v29 = vadd.f32 %v672_v28, %v671_v27 }
 0x1ec   : > { %674 = vadd.xlane.f32.xlu0 %v673_v29 }
 0x25d   : > { %v664_v30 = vpop.xlane.xlu2 %663 }
 0x25e   : > { %v665_v31 = vmul.f32 0.00390625, %v664_v30 }
 0x25f   : > { %v675_v32 = vpop.xlane.xlu0 %674 }
 0x260   : > { %v677_v33 = vmul.f32 %v665_v31, %v665_v31  ;;  %v676_v34 = vmul.f32 0.00390625, %v675_v32 }
 0x262   : > { %v678_v35 = vsub.f32 %v676_v34, %v677_v33 }
 0x264   : > { %v679_v36 = vmax.f32 %v678_v35, 0.0 }
 0x266   : > { %v680_v37 = vadd.f32 1e-05, %v679_v36 }
 0x268   : > { %2631 = vrsqrt.f32 %v680_v37  ;;  %vm687_vm3 = vweird.f32 %v680_v37 }
 0x26e   : > { %v2632_v38 = vpop.eup %2631 }
 0x26f   : > { %v682_v39 = vmul.f32 %v2632_v38, %v680_v37  ;;  %vm688_vm2 = vweird.f32 %v2632_v38 }
 0x270   : > { %vm689_vm4 = vmor %vm687_vm3, %vm688_vm2  ;;  %vm743_vm2 = vcmask 531456  }
 0x271   : > { %v683_v40 = vmul.f32 %v2632_v38, %v682_v39  ;;  %vm2932_vm3 = vmor %vm750_vm12, %vm749_vm11  ;;  %v2389_v39 = vld [vmem:[%s3319_s2 + $0xe] sm:$0x3]  ;;  %vm910_vm11 = vcmask 900096  }
 0x273   : > { %v684_v41 = vmul.f32 0.5, %v683_v40 }
 0x275   : > { %v685_v42 = vsub.f32 1.5, %v684_v41 }
 0x277   : > { %v686_v44 = vmul.f32 %v2632_v38, %v685_v42 }
 0x279   : > { %v690_v45 = vsel %vm689_vm4, %v2632_v38, %v686_v44  ;;  %vm2936_vm4 = vmor %vm754_vm14, %vm753_vm13 }
 0x27a   : > { %v691_v46 = vmul.f32 %v690_v45, %v647_v43 }
 0x27c   : > { %v692_v47 = vmul.f32 %v691_v46, %v665_v31 }
 0x27e   : > { %694 = vrot.lane.b32.xlu1 %v692_v47, %s2710_s14 }
 0x286   : > { %700 = vperm.xlu1 %2618, %v691_v46  }
 0x28e   : > { %2619 = vset.pattern.permute.xlu1 %v2711_v48 }
 0x2f0   : > { %v695_v49 = vpop.permute.xlu1 %694 }
 0x2f1   : > { %v697_v50 = vsub.f32 %v647_v43, %v695_v49 }
 0x2f3   : > { %708 = vperm.xlu1 %2619, %v697_v50  }
 0x2f8   : > { %v701_v52 = vpop.permute.xlu1 %700 }
 0x2f9   : > { %v703_v54 = vmul.f32 %v701_v52, %v2908_v4  ;;  %v704_v55 = vmul.f32 %v701_v52, %v645_v10  ;;  %v705_v56 = vmul.f32 %v701_v52, %v646_v11 }
 0x2fb   : > { %2620 = vset.pattern.permute.xlu1 %v2712_v51 }
 0x2fc   : > { %719 = vperm.xlu1 %2620, %v647_v43  }
 0x365   : > { %v709_v53 = vpop.permute.xlu1 %708 }
 0x366   : > { %v711_v57 = vadd.f32 %v709_v53, %v703_v54  ;;  %v712_v58 = vadd.f32 %v709_v53, %v704_v55  ;;  %v713_v59 = vadd.f32 %v709_v53, %v705_v56  ;;  %v2388_v56 = vld [vmem:[%s3319_s2 + $0xc] sm:$0x3] }
 0x368   : > { %vm714_vm7 = vcmp.ge.f32.partialorder %v711_v57, 0.0  ;;  %vm715_vm9 = vcmp.ge.f32.partialorder %v712_v58, 0.0  ;;  %vm716_vm10 = vcmp.ge.f32.partialorder %v713_v59, 0.0 }
 0x36e   : > { %v720_v60 = vpop.permute.xlu1 %719 }
 0x36f   : > { %v722_v61 = vmul.f32 %v720_v60, %v711_v57  ;;  %v723_v62 = vmul.f32 %v720_v60, %v712_v58  ;;  %v724_v0 = vmul.f32 %v720_v60, %v713_v59 }
 0x371   : > { %v727_v2 = vsel %vm716_vm10, %v713_v59, %v724_v0  ;;  %v725_v3 = vsel %vm714_vm7, %v711_v57, %v722_v61  ;;  %v726_v5 = vsel %vm715_vm9, %v712_v58, %v723_v62  ;;  %vm781_vm7 = vcmask 908288  }
 0x372   : > { %v730_v7 = vmul.f32 %v727_v2, %v2910_v6  ;;  %v728_v8 = vmul.f32 %v725_v3, %v2904_v63  ;;  %v729_v4 = vmul.f32 %v726_v5, %v2906_v1  ;;  %vm785_vm9 = vcmask 64512  }
 0x373   : > { %vm845_vm10 = vcmask 916480  }
 0x374   : > { %v732_v9 = vpack.c.bf16 %v730_v7, %v730_v7  ;;  %v731_v10 = vpack.c.bf16 %v729_v4, %v728_v8  ;;  %v2396_v8 = vld [vmem:[%s3319_s2 + $0x10] sm:$0x3] }
 0x376   : > { %v736_v11 = vrot.slane %v732_v9, 6  ;;  %v735_v12 = vrot.slane %v731_v10, 6 }
 0x378   : > { %739 = vrot.lane.b32.xlu2 %v736_v11, %s2713_s20  ;;  %737 = vrot.lane.b32.xlu1 %v735_v12, %s2713_s20 }
 0x3d2   : > { %v740_v13 = vpop.permute.xlu2 %739 }
 0x3d3   : > { %v742_v15 = vrot.slane %v740_v13, 4 }
 0x3ea   : > { %v738_v14 = vpop.permute.xlu1 %737 }
 0x3eb   : > { %v741_v17 = vrot.slane %v738_v14, 4 }
 0x3ed   : > { %v744_v19 = vsel %vm743_vm2, %v741_v17, %v738_v14  ;;  %v745_v20 = vsel %vm198_vm0, %v741_v17, %v742_v15  ;;  %v2400_v17 = vld [vmem:[%s3319_s2 + $0x12] sm:$0x3] }
 0x3ee   : > { %v746_v21 = vsel %vm743_vm2, %v745_v20, %v740_v13  ;;  %752 = vst.msk [vmem:[#allocation2 + $0x4] sm:$0xcc] %vm2932_vm3, %v744_v19 }
 0x3ef   : > { %756 = vst.msk [vmem:[#allocation2 + $0xc] sm:$0xcc] %vm2936_vm4, %v746_v21 }
 0x3f5   : > { %v759_v22 = vld [vmem:[#allocation2 + $0x4] sm:$0xff] }
 0x3f6   : > { %v766_v23 = vunpack.c.h.b16 %v759_v22  ;;  %v765_v24 = vunpack.c.l.b16 %v759_v22  ;;  %v760_v25 = vld [vmem:[#allocation2 + $0xc] sm:$0xff] }
 0x3f7   : > { %v767_v26 = vunpack.c.l.b16 %v760_v25  ;;  %v768_v30 = vunpack.c.h.b16 %v760_v25 }
 0x3f8   : > { %v770_v27 = vpack.c.b16 %v766_v23, %v766_v23  ;;  %v769_v28 = vpack.c.b16 %v765_v24, %v765_v24 }
 0x3f9   : > { %v771_v29 = vpack.c.b16 %v767_v26, %v767_v26  ;;  %v772_v31 = vpack.c.b16 %v768_v30, %v768_v30 }
 0x3fa   : > { %775 = vrot.lane.b32.xlu0 %v770_v27, %s2714_s22  ;;  %773 = vrot.lane.b32.xlu1 %v769_v28, %s2714_s22 }
 0x3fb   : > { %841 = vrot.lane.b32.xlu2 %v771_v29, %s2715_s23 }
 0x402   : > { %843 = vrot.lane.b32.xlu0 %v772_v31, %s2715_s23  ;;  %777 = vrot.lane.b32.xlu1 %v771_v29, %s2714_s22 }
 0x403   : > { %837 = vrot.lane.b32.xlu2 %v769_v28, %s2715_s23 }
 0x40a   : > { %906 = vrot.lane.b32.xlu0 %v771_v29, %s2716_s27  ;;  %839 = vrot.lane.b32.xlu1 %v770_v27, %s2715_s23 }
 0x40b   : > { %970 = vrot.lane.b32.xlu2 %v769_v28, %s2704_s6 }
 0x412   : > { %972 = vrot.lane.b32.xlu0 %v770_v27, %s2704_s6  ;;  %779 = vrot.lane.b32.xlu1 %v772_v31, %s2714_s22 }
 0x413   : > { %904 = vrot.lane.b32.xlu2 %v770_v27, %s2716_s27 }
 0x41a   : > { %1037 = vrot.lane.b32.xlu0 %v769_v28, %s2708_s10  ;;  %908 = vrot.lane.b32.xlu1 %v772_v31, %s2716_s27 }
 0x41b   : > { %1041 = vrot.lane.b32.xlu2 %v771_v29, %s2708_s10 }
 0x422   : > { %974 = vrot.lane.b32.xlu0 %v771_v29, %s2704_s6  ;;  %902 = vrot.lane.b32.xlu1 %v769_v28, %s2716_s27 }
 0x423   : > { %1106 = vrot.lane.b32.xlu2 %v770_v27, %s2709_s11 }
 0x42a   : > { %1108 = vrot.lane.b32.xlu0 %v771_v29, %s2709_s11  ;;  %1039 = vrot.lane.b32.xlu1 %v770_v27, %s2708_s10 }
 0x42b   : > { %1043 = vrot.lane.b32.xlu2 %v772_v31, %s2708_s10 }
 0x432   : > { %1104 = vrot.lane.b32.xlu0 %v769_v28, %s2709_s11  ;;  %976 = vrot.lane.b32.xlu1 %v772_v31, %s2704_s6  ;;  %v2404_v28 = vld [vmem:[%s3319_s2 + $0x14] sm:$0x3] }
 0x43a   : > { %1110 = vrot.lane.b32.xlu1 %v772_v31, %s2709_s11 }
 0x455   : > { %v842_v32 = vpop.permute.xlu2 %841 }
 0x45d   : > { %v838_v33 = vpop.permute.xlu2 %837 }
 0x465   : > { %v971_v34 = vpop.permute.xlu2 %970 }
 0x46c   : > { %v776_v35 = vpop.permute.xlu0 %775  ;;  %v774_v36 = vpop.permute.xlu1 %773 }
 0x46d   : > { %v782_v37 = vsel %vm781_vm7, %v774_v36, %v776_v35  ;;  %v905_v42 = vpop.permute.xlu2 %904 }
 0x46e   : > { %v790_v38 = vsel %vm198_vm0, %v782_v37, 0 }
 0x46f   : > { %805 = vmatpush.bf16.msra.mxu2 %v790_v38  ;;  %v2408_v38 = vld [vmem:[%s3319_s2 + $0x16] sm:$0x3] }
 0x472   : > { %2390 = vmatmul.msk.bf16.vlgmr.msra.gmra.mxu2 %vm785_vm9, %v2389_v39 }
 0x474   : > { %v844_v40 = vpop.permute.xlu0 %843  ;;  %v778_v41 = vpop.permute.xlu1 %777 }
 0x475   : > { %v848_v43 = vsel %vm845_vm10, %v842_v32, %v844_v40  ;;  %v783_v44 = vsel %vm781_vm7, %v776_v35, %v778_v41  ;;  %v1042_v55 = vpop.permute.xlu2 %1041 }
 0x476   : > { %v859_v45 = vsel %vm198_vm0, %v848_v43, 0  ;;  %v793_v46 = vsel %vm198_vm0, %v783_v44, 0 }
 0x477   : > { %818 = vmatpush.bf16.msra.mxu3 %v793_v46 }
 0x47a   : > { %2391 = vmatmul.msk.bf16.vlgmr.msra.gmra.mxu3 %vm785_vm9, %v2389_v39 }
 0x47b   : > { %894 = vmatpush.bf16.msrb.mxu3 %v859_v45 }
 0x47c   : > { %v907_v47 = vpop.permute.xlu0 %906  ;;  %v840_v48 = vpop.permute.xlu1 %839 }
 0x47d   : > { %v912_v49 = vsel %vm910_vm11, %v905_v42, %v907_v47  ;;  %v846_v50 = vsel %vm845_vm10, %v838_v33, %v840_v48  ;;  %v847_v51 = vsel %vm845_vm10, %v840_v48, %v842_v32  ;;  %v1107_v0 = vpop.permute.xlu2 %1106 }
 0x47e   : > { %v921_v52 = vsel %vm198_vm0, %v912_v49, 0  ;;  %v853_v53 = vsel %vm198_vm0, %v846_v50, 0  ;;  %v856_v54 = vsel %vm198_vm0, %v847_v51, 0 }
 0x47f   : > { %868 = vmatpush.bf16.msrb.mxu1 %v853_v53  ;;  %881 = vmatpush.bf16.msrb.mxu2 %v856_v54 }
 0x482   : > { %2393 = vmatmul.msk.bf16.vlgmr.msrb.gmra.mxu1 %vm785_vm9, %v2388_v56  ;;  %2394 = vmatmul.msk.bf16.vlgmr.msrb.gmra.mxu2 %vm785_vm9, %v2388_v56 }
 0x483   : > { %946 = vmatpush.bf16.msra.mxu1 %v921_v52 }
 0x484   : > { %v973_v57 = vpop.permute.xlu0 %972  ;;  %v780_v58 = vpop.permute.xlu1 %779 }
 0x485   : > { %v978_v59 = vsel %vm219_vm6, %v971_v34, %v973_v57  ;;  %v784_v60 = vsel %vm781_vm7, %v778_v41, %v780_v58  ;;  %v1044_v4 = vpop.permute.xlu2 %1043 }
 0x486   : > { %v985_v61 = vsel %vm198_vm0, %v978_v59, 0  ;;  %v796_v62 = vsel %vm198_vm0, %v784_v60, 0  ;;  %v1047_v15 = vsel %vm521_vm15, %v1042_v55, %v1044_v4 }
 0x487   : > { %831 = vmatpush.bf16.msrb.mxu0 %v796_v62  ;;  %1000 = vmatpush.bf16.msra.mxu3 %v985_v61  ;;  %v1058_v19 = vsel %vm198_vm0, %v1047_v15, 0 }
 0x48a   : > { %2392 = vmatmul.msk.bf16.vlgmr.msrb.gmra.mxu0 %vm785_vm9, %v2389_v39  ;;  %2395 = vmatmul.msk.bf16.vlgmr.msrb.gmra.mxu3 %vm785_vm9, %v2388_v56 }
 0x48c   : > { %v1038_v2 = vpop.permute.xlu0 %1037  ;;  %v909_v3 = vpop.permute.xlu1 %908 }
 0x48d   : > { %v913_v5 = vsel %vm910_vm11, %v907_v47, %v909_v3 }
 0x48e   : > { %v924_v7 = vsel %vm198_vm0, %v913_v5, 0 }
 0x48f   : > { %959 = vmatpush.bf16.msra.mxu2 %v924_v7 }
 0x492   : > { %2398 = vmatmul.msk.bf16.vlgmr.msra.gmra.mxu1 %vm785_vm9, %v2396_v8  ;;  %2399 = vmatmul.msk.bf16.vlgmr.msra.gmra.mxu2 %vm785_vm9, %v2396_v8 }
 0x494   : > { %v975_v9 = vpop.permute.xlu0 %974  ;;  %v903_v10 = vpop.permute.xlu1 %902 }
 0x495   : > { %v979_v11 = vsel %vm219_vm6, %v973_v57, %v975_v9  ;;  %v911_v12 = vsel %vm910_vm11, %v903_v10, %v905_v42  ;;  %vm1261_vm11 = vcmask 1041928  }
 0x496   : > { %v988_v13 = vsel %vm198_vm0, %v979_v11, 0  ;;  %v918_v14 = vsel %vm198_vm0, %v911_v12, 0 }
 0x497   : > { %933 = vmatpush.bf16.msra.mxu0 %v918_v14 }
 0x49a   : > { %2397 = vmatmul.msk.bf16.vlgmr.msra.gmra.mxu0 %vm785_vm9, %v2396_v8  ;;  %2401 = vmatmul.msk.bf16.vlgmr.msra.gmra.mxu3 %vm785_vm9, %v2400_v17 }
 0x49b   : > { %1013 = vmatpush.bf16.msrb.mxu0 %v988_v13 }
 0x49c   : > { %v1109_v20 = vpop.permute.xlu0 %1108  ;;  %v1040_v21 = vpop.permute.xlu1 %1039 }
 0x49d   : > { %v1113_v22 = vsel %vm589_vm1, %v1107_v0, %v1109_v20  ;;  %v1045_v23 = vsel %vm521_vm15, %v1038_v2, %v1040_v21  ;;  %v1046_v24 = vsel %vm521_vm15, %v1040_v21, %v1042_v55 }
 0x49e   : > { %v1122_v25 = vsel %vm198_vm0, %v1113_v22, 0  ;;  %v1052_v26 = vsel %vm198_vm0, %v1045_v23, 0  ;;  %v1055_v27 = vsel %vm198_vm0, %v1046_v24, 0 }
 0x49f   : > { %1093 = vmatpush.bf16.msra.mxu0 %v1058_v19  ;;  %1067 = vmatpush.bf16.msrb.mxu2 %v1052_v26 }
 0x4a0   : > { %1080 = vmatpush.bf16.msrb.mxu3 %v1055_v27 }
 0x4a2   : > { %2405 = vmatmul.msk.bf16.vlgmr.msrb.gmra.mxu2 %vm785_vm9, %v2404_v28 }
 0x4a3   : > { %1147 = vmatpush.bf16.msra.mxu2 %v1122_v25 }
 0x4a4   : > { %v1105_v29 = vpop.permute.xlu0 %1104  ;;  %v977_v30 = vpop.permute.xlu1 %976 }
 0x4a5   : > { %v1112_v31 = vsel %vm589_vm1, %v1105_v29, %v1107_v0  ;;  %v980_v32 = vsel %vm219_vm6, %v975_v9, %v977_v30 }
 0x4a6   : > { %v1119_v33 = vsel %vm198_vm0, %v1112_v31, 0  ;;  %v991_v34 = vsel %vm198_vm0, %v980_v32, 0 }
 0x4a7   : > { %1026 = vmatpush.bf16.msrb.mxu1 %v991_v34 }
 0x4aa   : > { %2402 = vmatmul.msk.bf16.vlgmr.msrb.gmra.mxu0 %vm785_vm9, %v2400_v17  ;;  %2403 = vmatmul.msk.bf16.vlgmr.msrb.gmra.mxu1 %vm785_vm9, %v2400_v17 }
 0x4ab   : > { %1134 = vmatpush.bf16.msra.mxu1 %v1119_v33  ;;  %2406 = vmatmul.msk.bf16.vlgmr.msrb.gmra.mxu3 %vm785_vm9, %v2404_v28 }
 0x4ac   : > { %v1111_v35 = vpop.permute.xlu1 %1110 }
 0x4ad   : > { %v1114_v36 = vsel %vm589_vm1, %v1109_v20, %v1111_v35 }
 0x4ae   : > { %v1125_v37 = vsel %vm198_vm0, %v1114_v36, 0 }
 0x4af   : > { %1160 = vmatpush.bf16.msra.mxu3 %v1125_v37 }
 0x4b2   : > { %2410 = vmatmul.msk.bf16.vlgmr.msra.gmra.mxu2 %vm785_vm9, %v2408_v38 }
 0x4ba   : > { %2407 = vmatmul.msk.bf16.vlgmr.msra.gmra.mxu0 %vm785_vm9, %v2404_v28  ;;  %2409 = vmatmul.msk.bf16.vlgmr.msra.gmra.mxu1 %vm785_vm9, %v2408_v38 }
 0x4bb   : > { %2411 = vmatmul.msk.bf16.vlgmr.msra.gmra.mxu3 %vm785_vm9, %v2408_v38 }
 0x4f5   : > { %v807_v39 = vpop.f32.mrf.mxu2 }
 0x4fd   : > { %v809_v40 = vpop.f32.mrf.mxu2  ;;  %v820_v41 = vpop.f32.mrf.mxu3 }
 0x4ff   : > { %v870_v42 = vpop.f32.mrf.mxu1 }
 0x500   : > { %v871_v7 = vadd.f32 %v870_v42, %v807_v39 }
 0x505   : > { %v822_v43 = vpop.f32.mrf.mxu3  ;;  %v883_v44 = vpop.f32.mrf.mxu2 }
 0x506   : > { %v884_v2 = vadd.f32 %v883_v44, %v820_v41 }
 0x507   : > { %v833_v45 = vpop.f32.mrf.mxu0  ;;  %v872_v46 = vpop.f32.mrf.mxu1 }
 0x50d   : > { %v885_v47 = vpop.f32.mrf.mxu2  ;;  %v896_v48 = vpop.f32.mrf.mxu3 }
 0x50e   : > { %v897_v15 = vadd.f32 %v896_v48, %v833_v45 }
 0x50f   : > { %v835_v49 = vpop.f32.mrf.mxu0  ;;  %v948_v50 = vpop.f32.mrf.mxu1 }
 0x510   : > { %v966_v8 = vadd.f32 %v948_v50, %v884_v2  ;;  %v2717_v50 = vmov 3  }
 0x511   : > { %2621 = vset.pattern.permute.xlu0 %v2717_v50 }
 0x515   : > { %v898_v51 = vpop.f32.mrf.mxu3  ;;  %v961_v52 = vpop.f32.mrf.mxu2 }
 0x516   : > { %v967_v22 = vadd.f32 %v961_v52, %v897_v15 }
 0x517   : > { %v935_v53 = vpop.f32.mrf.mxu0  ;;  %v950_v54 = vpop.f32.mrf.mxu1 }
 0x518   : > { %v965_v4 = vadd.f32 %v935_v53, %v871_v7  ;;  %v2719_v7 = vmov 5  }
 0x519   : > { %2623 = vset.pattern.permute.xlu1 %v2719_v7 }
 0x51d   : > { %v963_v55 = vpop.f32.mrf.mxu2  ;;  %v1002_v56 = vpop.f32.mrf.mxu3 }
 0x51e   : > { %v1032_v10 = vadd.f32 %v1002_v56, %v965_v4 }
 0x51f   : > { %v937_v57 = vpop.f32.mrf.mxu0 }
 0x525   : > { %v1004_v58 = vpop.f32.mrf.mxu3  ;;  %v1069_v59 = vpop.f32.mrf.mxu2 }
 0x526   : > { %v1099_v13 = vadd.f32 %v1069_v59, %v1032_v10 }
 0x527   : > { %v1015_v60 = vpop.f32.mrf.mxu0  ;;  %v1028_v61 = vpop.f32.mrf.mxu1 }
 0x528   : > { %v1033_v9 = vadd.f32 %v1015_v60, %v966_v8  ;;  %v1034_v24 = vadd.f32 %v1028_v61, %v967_v22  ;;  %v1169_v61 = vld [vmem:[%s3320_s3] sm:$0xf] }
 0x52d   : > { %v1071_v62 = vpop.f32.mrf.mxu2 }
 0x52e   : > { %v1082_v0 = vpop.f32.mrf.mxu3 }
 0x52f   : > { %v1017_v3 = vpop.f32.mrf.mxu0  ;;  %v1030_v5 = vpop.f32.mrf.mxu1  ;;  %v1100_v11 = vadd.f32 %v1082_v0, %v1033_v9 }
 0x530   : > { %v2718_v5 = vmov 4  }
 0x535   : > { %v1149_v12 = vpop.f32.mrf.mxu2 }
 0x536   : > { %v1084_v14 = vpop.f32.mrf.mxu3  ;;  %v3031_v17 = vadd.f32 %v1149_v12, %v1100_v11 }
 0x537   : > { %v1095_v19 = vpop.f32.mrf.mxu0  ;;  %v1136_v20 = vpop.f32.mrf.mxu1 }
 0x538   : > { %v3033_v21 = vadd.f32 %v1136_v20, %v1099_v13  ;;  %v1171_v25 = vmul.f32 %v3031_v17, %v2906_v1  ;;  %v1101_v26 = vadd.f32 %v1095_v19, %v1034_v24 }
 0x53a   : > { %v1170_v23 = vmul.f32 %v3033_v21, %v2904_v63  ;;  %v1182_v30 = vmul.f32 %v1171_v25, %v1171_v25  ;;  %v1174_v36 = vsel %vm198_vm0, %v1171_v25, 0.0 }
 0x53c   : > { %v1181_v27 = vmul.f32 %v1170_v23, %v1170_v23  ;;  %v1173_v34 = vsel %vm198_vm0, %v1170_v23, 0.0  ;;  %v1185_v41 = vsel %vm198_vm0, %v1182_v30, 0.0 }
 0x53d   : > { %v1151_v28 = vpop.f32.mrf.mxu2  ;;  %v1175_v38 = vadd.f32 %v1174_v36, %v1173_v34 }
 0x53e   : > { %v1162_v29 = vpop.f32.mrf.mxu3  ;;  %v1184_v37 = vsel %vm198_vm0, %v1181_v27, 0.0 }
 0x53f   : > { %v1168_v31 = vadd.f32 %v1162_v29, %v1101_v26  ;;  %v1097_v32 = vpop.f32.mrf.mxu0  ;;  %v1138_v33 = vpop.f32.mrf.mxu1  ;;  %v1186_v43 = vadd.f32 %v1185_v41, %v1184_v37  ;;  %v2424_v37 = vld [vmem:[#allocation2 + $0x8] sm:$0xf] }
 0x540   : > { %v2533_v32 = vld [vmem:[#allocation2 + $0x10] sm:$0x30] }
 0x541   : > { %v1172_v35 = vmul.f32 %v1168_v31, %v2910_v6 }
 0x543   : > { %v1176_v39 = vsel %vm198_vm0, %v1172_v35, 0.0  ;;  %v1183_v40 = vmul.f32 %v1172_v35, %v1172_v35 }
 0x544   : > { %v1177_v42 = vadd.f32 %v1176_v39, %v1175_v38  ;;  %v2531_v39 = vld [vmem:[#allocation2 + $0x4] sm:$0xf] }
 0x545   : > { %v1187_v44 = vsel %vm198_vm0, %v1183_v40, 0.0 }
 0x546   : > { %v1164_v45 = vpop.f32.mrf.mxu3  ;;  %1178 = vadd.xlane.f32.xlu1 %v1177_v42  ;;  %v1188_v46 = vadd.f32 %v1187_v44, %v1186_v43 }
 0x548   : > { %1189 = vadd.xlane.f32.xlu2 %v1188_v46 }
 0x55f   : > { %1234 = vperm.xlu1 %2623, %v1169_v61  }
 0x5b9   : > { %v1179_v47 = vpop.xlane.xlu1 %1178 }
 0x5ba   : > { %v1180_v48 = vmul.f32 0.00390625, %v1179_v47  ;;  %v2532_v47 = vld [vmem:[#allocation2 + $0xc] sm:$0xf] }
 0x5bb   : > { %v1190_v49 = vpop.xlane.xlu2 %1189 }
 0x5bc   : > { %v1192_v51 = vmul.f32 %v1180_v48, %v1180_v48  ;;  %v1191_v52 = vmul.f32 0.00390625, %v1190_v49 }
 0x5be   : > { %v1193_v53 = vsub.f32 %v1191_v52, %v1192_v51  ;;  %v2451_v51 = vld [vmem:[#allocation2 + $0xc] sm:$0xf] }
 0x5c0   : > { %v1194_v54 = vmax.f32 %v1193_v53, 0.0 }
 0x5c2   : > { %v1195_v55 = vadd.f32 1e-05, %v1194_v54  ;;  %v2535_v54 = vld [vmem:[#allocation2 + $0x8] sm:$0xf] }
 0x5c4   : > { %2633 = vrsqrt.f32 %v1195_v55  ;;  %vm1202_vm13 = vweird.f32 %v1195_v55 }
 0x5ca   : > { %v2634_v56 = vpop.eup %2633 }
 0x5cb   : > { %v1197_v57 = vmul.f32 %v2634_v56, %v1195_v55  ;;  %vm1203_vm12 = vweird.f32 %v2634_v56 }
 0x5cc   : > { %vm1204_vm14 = vmor %vm1202_vm13, %vm1203_vm12  ;;  %vm1264_vm13 = vcmask 529412  }
 0x5cd   : > { %v1198_v58 = vmul.f32 %v2634_v56, %v1197_v57  ;;  %vm1262_vm12 = vmor %vm227_vm5, %vm1261_vm11  ;;  %v2443_v57 = vld [vmem:[#allocation2 + $0x4] sm:$0xf] }
 0x5ce   : > { %vm1265_vm5 = vmor %vm1264_vm13, %vm230_vm8  ;;  %vm1299_vm8 = vcmask 252928  }
 0x5cf   : > { %v1199_v59 = vmul.f32 0.5, %v1198_v58 }
 0x5d1   : > { %v1200_v60 = vsub.f32 1.5, %v1199_v59  ;;  %v1235_v14 = vpop.permute.xlu1 %1234 }
 0x5d3   : > { %v1201_v62 = vmul.f32 %v2634_v56, %v1200_v60  ;;  %v2536_v60 = vld [vmem:[#allocation2 + $0x10] sm:$0xf] }
 0x5d5   : > { %v1205_v0 = vsel %vm1204_vm14, %v2634_v56, %v1201_v62  ;;  %vm1307_vm14 = vcmask 1045504  }
 0x5d6   : > { %v1206_v2 = vmul.f32 %v1205_v0, %v1169_v61 }
 0x5d8   : > { %v1207_v3 = vmul.f32 %v1206_v2, %v1180_v48 }
 0x5da   : > { %1209 = vrot.lane.b32.xlu0 %v1207_v3, %s2710_s14 }
 0x5e2   : > { %1215 = vperm.xlu0 %2621, %v1206_v2  }
 0x5ea   : > { %2622 = vset.pattern.permute.xlu0 %v2718_v5 }
 0x64c   : > { %v1210_v8 = vpop.permute.xlu0 %1209 }
 0x64d   : > { %v1212_v4 = vsub.f32 %v1169_v61, %v1210_v8 }
 0x64f   : > { %1223 = vperm.xlu0 %2622, %v1212_v4   ;;  %v2413_v4 = vld [vmem:[%s3319_s2 + $0x1a] sm:$0x3] }
 0x654   : > { %v1216_v9 = vpop.permute.xlu0 %1215 }
 0x655   : > { %v1218_v10 = vmul.f32 %v1216_v9, %v3033_v21  ;;  %v1219_v11 = vmul.f32 %v1216_v9, %v3031_v17  ;;  %v1220_v12 = vmul.f32 %v1216_v9, %v1168_v31  ;;  %v2416_v31 = vld [vmem:[#allocation2] sm:$0xf] }
 0x656   : > { %v2417_v33 = vor.u32 %v2533_v32, %v2416_v31 }
 0x6c1   : > { %v1224_v13 = vpop.permute.xlu0 %1223 }
 0x6c2   : > { %v1226_v15 = vadd.f32 %v1224_v13, %v1218_v10  ;;  %v1227_v19 = vadd.f32 %v1224_v13, %v1219_v11  ;;  %v1228_v20 = vadd.f32 %v1224_v13, %v1220_v12  ;;  %v2412_v13 = vld [vmem:[%s3319_s2 + $0x18] sm:$0x3] }
 0x6c4   : > { %vm1229_vm7 = vcmp.ge.f32.partialorder %v1226_v15, 0.0  ;;  %vm1230_vm9 = vcmp.ge.f32.partialorder %v1227_v19, 0.0  ;;  %v1237_v22 = vmul.f32 %v1235_v14, %v1226_v15  ;;  %v1238_v23 = vmul.f32 %v1235_v14, %v1227_v19 }
 0x6c5   : > { %v1239_v24 = vmul.f32 %v1235_v14, %v1228_v20  ;;  %vm1231_vm10 = vcmp.ge.f32.partialorder %v1228_v20, 0.0 }
 0x6c6   : > { %v1240_v25 = vsel %vm1229_vm7, %v1226_v15, %v1237_v22  ;;  %v1241_v26 = vsel %vm1230_vm9, %v1227_v19, %v1238_v23  ;;  %vm1303_vm7 = vcmask 97280   ;;  %vm1364_vm9 = vcmask 261120  }
 0x6c7   : > { %v1242_v27 = vsel %vm1231_vm10, %v1228_v20, %v1239_v24  ;;  %v1243_v28 = vmul.f32 %v1240_v25, %v2904_v63  ;;  %v1244_v21 = vmul.f32 %v1241_v26, %v2906_v1  ;;  %vm1429_vm10 = vcmask 244736  }
 0x6c8   : > { %v1245_v17 = vmul.f32 %v1242_v27, %v2910_v6 }
 0x6c9   : > { %v1246_v29 = vpack.c.bf16 %v1244_v21, %v1243_v28 }
 0x6ca   : > { %v1247_v30 = vpack.c.bf16 %v1245_v17, %v1245_v17 }
 0x6cb   : > { %1250 = vrot.lane.b32.xlu2 %v1246_v29, %s2713_s20 }
 0x6cc   : > { %1252 = vrot.lane.b32.xlu0 %v1247_v30, %s2713_s20 }
 0x6d4   : > { %1291 = vrot.lane.b32.xlu0 %v2417_v33, %s2720_s30 }
 0x725   : > { %v1251_v34 = vpop.permute.xlu2 %1250 }
 0x726   : > { %v1254_v35 = vrot.slane %v1251_v34, 4 }
 0x728   : > { %v1256_v36 = vsel %vm743_vm2, %v1254_v35, %v1251_v34 }
 0x729   : > { %1263 = vst.msk [vmem:[#allocation2 + $0x18] sm:$0x33] %vm1262_vm12, %v1256_v36 }
 0x730   : > { %v2534_v38 = vld [vmem:[#allocation2 + $0x18] sm:$0x30]  ;;  %v2418_v40 = vld [vmem:[#allocation2 + $0x14] sm:$0x30] }
 0x731   : > { %v2425_v41 = vor.u32 %v2534_v38, %v2424_v37  ;;  %v2421_v42 = vor.u32 %v2531_v39, %v2418_v40  ;;  %v2445_v53 = vld [vmem:[#allocation2 + $0x18] sm:$0x30]  ;;  %v2537_v56 = vld [vmem:[#allocation2 + $0x14] sm:$0x30]  ;;  %v2436_v39 = vld [vmem:[%s3319_s2 + $0x1c] sm:$0x3] }
 0x732   : > { %v2448_v55 = vor.u32 %v2535_v54, %v2445_v53  ;;  %v2444_v58 = vor.u32 %v2537_v56, %v2443_v57 }
 0x733   : > { %1295 = vrot.lane.b32.xlu2 %v2425_v41, %s2720_s30  ;;  %1293 = vrot.lane.b32.xlu0 %v2421_v42, %s2720_s30 }
 0x73b   : > { %1358 = vrot.lane.b32.xlu2 %v2421_v42, %s2721_s5  ;;  %1356 = vrot.lane.b32.xlu0 %v2417_v33, %s2721_s5 }
 0x73e   : > { %v1253_v43 = vpop.permute.xlu0 %1252 }
 0x73f   : > { %v1255_v44 = vrot.slane %v1253_v43, 4 }
 0x741   : > { %v1257_v45 = vsel %vm198_vm0, %v1254_v35, %v1255_v44 }
 0x742   : > { %v1258_v46 = vsel %vm743_vm2, %v1257_v45, %v1253_v43 }
 0x743   : > { %1266 = vst.msk [vmem:[#allocation2 + $0x20] sm:$0x33] %vm1265_vm5, %v1258_v46  ;;  %1421 = vrot.lane.b32.xlu2 %v2417_v33, %s2722_s7 }
 0x746   : > { %v1292_v62 = vpop.permute.xlu0 %1291 }
 0x74a   : > { %v2426_v48 = vld [vmem:[#allocation2 + $0x1c] sm:$0x30]  ;;  %v2453_v59 = vld [vmem:[#allocation2 + $0x20] sm:$0x30] }
 0x74b   : > { %v2429_v49 = vor.u32 %v2532_v47, %v2426_v48  ;;  %v2538_v50 = vld [vmem:[#allocation2 + $0x1c] sm:$0x30]  ;;  %v2456_v61 = vor.u32 %v2536_v60, %v2453_v59  ;;  %v2440_v47 = vld [vmem:[%s3319_s2 + $0x1e] sm:$0x3] }
 0x74c   : > { %v2452_v52 = vor.u32 %v2538_v50, %v2451_v51 }
 0x74d   : > { %1297 = vrot.lane.b32.xlu1 %v2429_v49, %s2720_s30  ;;  %1427 = vrot.lane.b32.xlu2 %v2429_v49, %s2722_s7 }
 0x74e   : > { %1362 = vrot.lane.b32.xlu0 %v2429_v49, %s2721_s5 }
 0x755   : > { %1360 = vrot.lane.b32.xlu1 %v2425_v41, %s2721_s5  ;;  %1513 = vrot.lane.b32.xlu2 %v2452_v52, %s2704_s6  ;;  %s2659_s5 = scalar_lea.hbm %s3321_s4, 24 }
 0x756   : > { %1425 = vrot.lane.b32.xlu0 %v2425_v41, %s2722_s7 }
 0x75d   : > { %1423 = vrot.lane.b32.xlu1 %v2421_v42, %s2722_s7  ;;  %1578 = vrot.lane.b32.xlu2 %v2448_v55, %s2708_s10 }
 0x75e   : > { %1511 = vrot.lane.b32.xlu0 %v2448_v55, %s2704_s6 }
 0x765   : > { %1509 = vrot.lane.b32.xlu1 %v2444_v58, %s2704_s6  ;;  %1643 = vrot.lane.b32.xlu2 %v2444_v58, %s2709_s11 }
 0x766   : > { %1576 = vrot.lane.b32.xlu0 %v2444_v58, %s2708_s10 }
 0x76d   : > { %1515 = vrot.lane.b32.xlu1 %v2456_v61, %s2704_s6  ;;  %1649 = vrot.lane.b32.xlu2 %v2456_v61, %s2709_s11 }
 0x76e   : > { %1582 = vrot.lane.b32.xlu0 %v2456_v61, %s2708_s10 }
 0x775   : > { %1580 = vrot.lane.b32.xlu1 %v2452_v52, %s2708_s10 }
 0x776   : > { %1647 = vrot.lane.b32.xlu0 %v2452_v52, %s2709_s11 }
 0x77d   : > { %1645 = vrot.lane.b32.xlu1 %v2448_v55, %s2709_s11 }
 0x78d   : > { %v1296_v0 = vpop.permute.xlu2 %1295 }
 0x795   : > { %v1359_v9 = vpop.permute.xlu2 %1358 }
 0x79d   : > { %v1422_v14 = vpop.permute.xlu2 %1421 }
 0x7a5   : > { %v1294_v2 = vpop.permute.xlu0 %1293 }
 0x7a6   : > { %v1300_v3 = vsel %vm1299_vm8, %v1292_v62, %v1294_v2  ;;  %v1301_v5 = vsel %vm1299_vm8, %v1294_v2, %v1296_v0  ;;  %v2460_v62 = vld [vmem:[%s3319_s2 + $0x20] sm:$0x3] }
 0x7a7   : > { %v1309_v7 = vsel %vm1307_vm14, %v1300_v3, 0  ;;  %v1312_v8 = vsel %vm1307_vm14, %v1301_v5, 0  ;;  %v1428_v19 = vpop.permute.xlu2 %1427 }
 0x7a8   : > { %1324 = vmatpush.bf16.msrb.mxu0 %v1309_v7  ;;  %1337 = vmatpush.bf16.msrb.mxu1 %v1312_v8  ;;  %v2464_v8 = vld [vmem:[%s3319_s2 + $0x22] sm:$0x3] }
 0x7ab   : > { %2430 = vmatmul.msk.bf16.vlgmr.msrb.gmra.mxu0 %vm1303_vm7, %v2413_v4  ;;  %2431 = vmatmul.msk.bf16.vlgmr.msrb.gmra.mxu1 %vm1303_vm7, %v2413_v4 }
 0x7ad   : > { %v1357_v10 = vpop.permute.xlu0 %1356 }
 0x7ae   : > { %v1365_v11 = vsel %vm1364_vm9, %v1357_v10, %v1359_v9 }
 0x7af   : > { %v1372_v12 = vsel %vm1307_vm14, %v1365_v11, 0  ;;  %v1514_v29 = vpop.permute.xlu2 %1513 }
 0x7b0   : > { %1387 = vmatpush.bf16.msrb.mxu3 %v1372_v12 }
 0x7b3   : > { %2433 = vmatmul.msk.bf16.vlgmr.msrb.gmra.mxu3 %vm1303_vm7, %v2412_v13 }
 0x7b7   : > { %v1579_v40 = vpop.permute.xlu2 %1578 }
 0x7bf   : > { %v1298_v15 = vpop.permute.xlu1 %1297  ;;  %v1644_v48 = vpop.permute.xlu2 %1643 }
 0x7c0   : > { %v1302_v20 = vsel %vm1299_vm8, %v1296_v0, %v1298_v15  ;;  %v1363_v22 = vpop.permute.xlu0 %1362 }
 0x7c1   : > { %v1315_v23 = vsel %vm1307_vm14, %v1302_v20, 0 }
 0x7c2   : > { %1350 = vmatpush.bf16.msrb.mxu2 %v1315_v23 }
 0x7c5   : > { %2432 = vmatmul.msk.bf16.vlgmr.msrb.gmra.mxu2 %vm1303_vm7, %v2413_v4 }
 0x7c7   : > { %v1361_v24 = vpop.permute.xlu1 %1360  ;;  %v1650_v54 = vpop.permute.xlu2 %1649 }
 0x7c8   : > { %v1366_v25 = vsel %vm1364_vm9, %v1359_v9, %v1361_v24  ;;  %v1367_v26 = vsel %vm1364_vm9, %v1361_v24, %v1363_v22  ;;  %v1426_v27 = vpop.permute.xlu0 %1425 }
 0x7c9   : > { %v1375_v28 = vsel %vm1307_vm14, %v1366_v25, 0  ;;  %v1378_v21 = vsel %vm1307_vm14, %v1367_v26, 0  ;;  %v1432_v17 = vsel %vm1429_vm10, %v1426_v27, %v1428_v19 }
 0x7ca   : > { %v1443_v30 = vsel %vm1307_vm14, %v1432_v17, 0  ;;  %1400 = vmatpush.bf16.msra.mxu0 %v1375_v28  ;;  %1413 = vmatpush.bf16.msra.mxu1 %v1378_v21 }
 0x7cd   : > { %2434 = vmatmul.msk.bf16.vlgmr.msra.gmra.mxu0 %vm1303_vm7, %v2412_v13  ;;  %2435 = vmatmul.msk.bf16.vlgmr.msra.gmra.mxu1 %vm1303_vm7, %v2412_v13 }
 0x7ce   : > { %1478 = vmatpush.bf16.msrb.mxu0 %v1443_v30 }
 0x7cf   : > { %v1424_v31 = vpop.permute.xlu1 %1423 }
 0x7d0   : > { %v1430_v32 = vsel %vm1429_vm10, %v1422_v14, %v1424_v31  ;;  %v1431_v33 = vsel %vm1429_vm10, %v1424_v31, %v1426_v27  ;;  %v1512_v34 = vpop.permute.xlu0 %1511 }
 0x7d1   : > { %v1437_v35 = vsel %vm1307_vm14, %v1430_v32, 0  ;;  %v1440_v36 = vsel %vm1307_vm14, %v1431_v33, 0  ;;  %v1518_v37 = vsel %vm219_vm6, %v1512_v34, %v1514_v29 }
 0x7d2   : > { %v1527_v38 = vsel %vm1307_vm14, %v1518_v37, 0  ;;  %1452 = vmatpush.bf16.msra.mxu2 %v1437_v35  ;;  %1465 = vmatpush.bf16.msra.mxu3 %v1440_v36 }
 0x7d5   : > { %2437 = vmatmul.msk.bf16.vlgmr.msra.gmra.mxu2 %vm1303_vm7, %v2436_v39  ;;  %2438 = vmatmul.msk.bf16.vlgmr.msra.gmra.mxu3 %vm1303_vm7, %v2436_v39 }
 0x7d6   : > { %1552 = vmatpush.bf16.msrb.mxu2 %v1527_v38 }
 0x7d7   : > { %v1510_v41 = vpop.permute.xlu1 %1509 }
 0x7d8   : > { %v1517_v42 = vsel %vm219_vm6, %v1510_v41, %v1512_v34  ;;  %v1577_v43 = vpop.permute.xlu0 %1576 }
 0x7d9   : > { %v1524_v44 = vsel %vm1307_vm14, %v1517_v42, 0  ;;  %v1584_v45 = vsel %vm521_vm15, %v1577_v43, %v1579_v40 }
 0x7da   : > { %v1591_v46 = vsel %vm1307_vm14, %v1584_v45, 0  ;;  %1539 = vmatpush.bf16.msrb.mxu1 %v1524_v44 }
 0x7db   : > { %1606 = vmatpush.bf16.msra.mxu0 %v1591_v46 }
 0x7dd   : > { %2439 = vmatmul.msk.bf16.vlgmr.msrb.gmra.mxu0 %vm1303_vm7, %v2436_v39  ;;  %2457 = vmatmul.msk.bf16.vlgmr.msrb.gmra.mxu1 %vm1303_vm7, %v2440_v47 }
 0x7df   : > { %v1516_v49 = vpop.permute.xlu1 %1515 }
 0x7e0   : > { %v1519_v50 = vsel %vm219_vm6, %v1514_v29, %v1516_v49  ;;  %v1583_v51 = vpop.permute.xlu0 %1582 }
 0x7e1   : > { %v1530_v52 = vsel %vm1307_vm14, %v1519_v50, 0 }
 0x7e2   : > { %1565 = vmatpush.bf16.msrb.mxu3 %v1530_v52 }
 0x7e5   : > { %2458 = vmatmul.msk.bf16.vlgmr.msrb.gmra.mxu2 %vm1303_vm7, %v2440_v47  ;;  %2459 = vmatmul.msk.bf16.vlgmr.msrb.gmra.mxu3 %vm1303_vm7, %v2440_v47 }
 0x7e7   : > { %v1581_v53 = vpop.permute.xlu1 %1580 }
 0x7e8   : > { %v1585_v55 = vsel %vm521_vm15, %v1579_v40, %v1581_v53  ;;  %v1586_v56 = vsel %vm521_vm15, %v1581_v53, %v1583_v51  ;;  %v1648_v57 = vpop.permute.xlu0 %1647 }
 0x7e9   : > { %v1594_v58 = vsel %vm1307_vm14, %v1585_v55, 0  ;;  %v1597_v59 = vsel %vm1307_vm14, %v1586_v56, 0  ;;  %v1653_v60 = vsel %vm589_vm1, %v1648_v57, %v1650_v54 }
 0x7ea   : > { %v1664_v61 = vsel %vm1307_vm14, %v1653_v60, 0  ;;  %1619 = vmatpush.bf16.msra.mxu1 %v1594_v58  ;;  %1632 = vmatpush.bf16.msra.mxu2 %v1597_v59 }
 0x7ed   : > { %2461 = vmatmul.msk.bf16.vlgmr.msra.gmra.mxu0 %vm1303_vm7, %v2460_v62  ;;  %2462 = vmatmul.msk.bf16.vlgmr.msra.gmra.mxu1 %vm1303_vm7, %v2460_v62 }
 0x7ee   : > { %1699 = vmatpush.bf16.msrb.mxu1 %v1664_v61 }
 0x7ef   : > { %v1646_v0 = vpop.permute.xlu1 %1645 }
 0x7f0   : > { %v1651_v2 = vsel %vm589_vm1, %v1644_v48, %v1646_v0  ;;  %v1652_v3 = vsel %vm589_vm1, %v1646_v0, %v1648_v57 }
 0x7f1   : > { %v1658_v5 = vsel %vm1307_vm14, %v1651_v2, 0  ;;  %v1661_v7 = vsel %vm1307_vm14, %v1652_v3, 0 }
 0x7f2   : > { %1673 = vmatpush.bf16.msra.mxu3 %v1658_v5  ;;  %1686 = vmatpush.bf16.msrb.mxu0 %v1661_v7 }
 0x7f5   : > { %2463 = vmatmul.msk.bf16.vlgmr.msra.gmra.mxu2 %vm1303_vm7, %v2460_v62  ;;  %2465 = vmatmul.msk.bf16.vlgmr.msra.gmra.mxu3 %vm1303_vm7, %v2464_v8 }
 0x7fd   : > { %2466 = vmatmul.msk.bf16.vlgmr.msrb.gmra.mxu0 %vm1303_vm7, %v2464_v8  ;;  %2467 = vmatmul.msk.bf16.vlgmr.msrb.gmra.mxu1 %vm1303_vm7, %v2464_v8 }
 0x828   : > { %v1326_v4 = vpop.f32.mrf.mxu0  ;;  %v1339_v9 = vpop.f32.mrf.mxu1 }
 0x830   : > { %v1328_v10 = vpop.f32.mrf.mxu0  ;;  %v1341_v11 = vpop.f32.mrf.mxu1 }
 0x836   : > { %v1389_v12 = vpop.f32.mrf.mxu3 }
 0x837   : > { %v1390_v34 = vadd.f32 %v1389_v12, %v1326_v4 }
 0x83e   : > { %v1391_v13 = vpop.f32.mrf.mxu3 }
 0x848   : > { %v1352_v14 = vpop.f32.mrf.mxu2 }
 0x84a   : > { %v1402_v15 = vpop.f32.mrf.mxu0  ;;  %v1415_v19 = vpop.f32.mrf.mxu1 }
 0x84b   : > { %v1403_v37 = vadd.f32 %v1402_v15, %v1339_v9  ;;  %v1416_v41 = vadd.f32 %v1415_v19, %v1352_v14 }
 0x850   : > { %v1354_v20 = vpop.f32.mrf.mxu2 }
 0x852   : > { %v1404_v22 = vpop.f32.mrf.mxu0  ;;  %v1417_v23 = vpop.f32.mrf.mxu1 }
 0x853   : > { %v2723_v23 = vmov 6  }
 0x854   : > { %2624 = vset.pattern.permute.xlu2 %v2723_v23 }
 0x858   : > { %v1454_v24 = vpop.f32.mrf.mxu2  ;;  %v1467_v25 = vpop.f32.mrf.mxu3 }
 0x859   : > { %v1484_v38 = vadd.f32 %v1454_v24, %v1390_v34  ;;  %v1485_v42 = vadd.f32 %v1467_v25, %v1403_v37  ;;  %v2724_v37 = vmov 7  }
 0x85a   : > { %v1480_v26 = vpop.f32.mrf.mxu0  ;;  %v1541_v27 = vpop.f32.mrf.mxu1 }
 0x85b   : > { %v1486_v43 = vadd.f32 %v1480_v26, %v1416_v41  ;;  %v1571_v44 = vadd.f32 %v1541_v27, %v1484_v38  ;;  %v2472_v41 = vld [vmem:[#allocation2] sm:$0xf] }
 0x860   : > { %v1456_v28 = vpop.f32.mrf.mxu2  ;;  %v1469_v21 = vpop.f32.mrf.mxu3 }
 0x862   : > { %v1482_v17 = vpop.f32.mrf.mxu0  ;;  %v1543_v29 = vpop.f32.mrf.mxu1 }
 0x868   : > { %v1554_v30 = vpop.f32.mrf.mxu2  ;;  %v1567_v31 = vpop.f32.mrf.mxu3 }
 0x869   : > { %v1572_v45 = vadd.f32 %v1554_v30, %v1485_v42  ;;  %v1573_v46 = vadd.f32 %v1567_v31, %v1486_v43  ;;  %v2540_v42 = vld [vmem:[#allocation2 + $0x10] sm:$0xf0] }
 0x86a   : > { %v1608_v32 = vpop.f32.mrf.mxu0  ;;  %v1621_v33 = vpop.f32.mrf.mxu1  ;;  %v3172_v43 = vor.u32 %v2540_v42, %v2472_v41 }
 0x86b   : > { %v1638_v47 = vadd.f32 %v1608_v32, %v1571_v44  ;;  %v1639_v50 = vadd.f32 %v1621_v33, %v1572_v45  ;;  %v1708_v32 = vld [vmem:[%s3320_s3] sm:$0xf] }
 0x86c   : > { %1906 = vmatpush.bf16.msra.mxu1 %v3172_v43 }
 0x870   : > { %v1556_v35 = vpop.f32.mrf.mxu2  ;;  %v1569_v36 = vpop.f32.mrf.mxu3 }
 0x872   : > { %v1610_v39 = vpop.f32.mrf.mxu0  ;;  %v1623_v40 = vpop.f32.mrf.mxu1 }
 0x873   : > { %v2725_v40 = vmov 8  }
 0x878   : > { %v1634_v48 = vpop.f32.mrf.mxu2  ;;  %v1675_v49 = vpop.f32.mrf.mxu3 }
 0x879   : > { %v1640_v51 = vadd.f32 %v1634_v48, %v1573_v46  ;;  %v3150_v52 = vadd.f32 %v1675_v49, %v1638_v47 }
 0x87a   : > { %v1688_v53 = vpop.f32.mrf.mxu0  ;;  %v1701_v54 = vpop.f32.mrf.mxu1 }
 0x87b   : > { %v1709_v55 = vmul.f32 %v3150_v52, %v2904_v63  ;;  %v3154_v56 = vadd.f32 %v1688_v53, %v1639_v50  ;;  %v3156_v57 = vadd.f32 %v1701_v54, %v1640_v51 }
 0x87d   : > { %v1720_v58 = vmul.f32 %v1709_v55, %v1709_v55  ;;  %v1710_v59 = vmul.f32 %v3154_v56, %v2906_v1  ;;  %v1711_v60 = vmul.f32 %v3156_v57, %v2910_v6  ;;  %v1712_v62 = vsel %vm198_vm0, %v1709_v55, 0.0 }
 0x87f   : > { %v1721_v61 = vmul.f32 %v1710_v59, %v1710_v59  ;;  %v1713_v0 = vsel %vm198_vm0, %v1710_v59, 0.0  ;;  %v1722_v2 = vmul.f32 %v1711_v60, %v1711_v60  ;;  %v1715_v8 = vsel %vm198_vm0, %v1711_v60, 0.0 }
 0x880   : > { %v1636_v3 = vpop.f32.mrf.mxu2  ;;  %v1677_v5 = vpop.f32.mrf.mxu3  ;;  %v1714_v7 = vadd.f32 %v1713_v0, %v1712_v62  ;;  %v1723_v4 = vsel %vm198_vm0, %v1720_v58, 0.0 }
 0x881   : > { %v1724_v9 = vsel %vm198_vm0, %v1721_v61, 0.0  ;;  %v1726_v14 = vsel %vm198_vm0, %v1722_v2, 0.0 }
 0x882   : > { %v1690_v10 = vpop.f32.mrf.mxu0  ;;  %v1703_v11 = vpop.f32.mrf.mxu1  ;;  %v1716_v12 = vadd.f32 %v1715_v8, %v1714_v7  ;;  %v1725_v13 = vadd.f32 %v1724_v9, %v1723_v4  ;;  %v2480_v4 = vld [vmem:[#allocation2 + $0x8] sm:$0xf]  ;;  %v2539_v9 = vld [vmem:[#allocation2 + $0x4] sm:$0xf] }
 0x884   : > { %1717 = vadd.xlane.f32.xlu1 %v1716_v12  ;;  %v1727_v15 = vadd.f32 %v1726_v14, %v1725_v13 }
 0x886   : > { %1728 = vadd.xlane.f32.xlu0 %v1727_v15  ;;  %v2544_v15 = vld [vmem:[#allocation2 + $0x8] sm:$0xf] }
 0x89a   : > { %1830 = vrot.lane.b32.xlu0 %v3172_v43, %s2726_s12 }
 0x8f7   : > { %v1718_v19 = vpop.xlane.xlu1 %1717 }
 0x8f8   : > { %v1719_v20 = vmul.f32 0.00390625, %v1718_v19 }
 0x8f9   : > { %v1729_v22 = vpop.xlane.xlu0 %1728 }
 0x8fa   : > { %v1731_v24 = vmul.f32 %v1719_v20, %v1719_v20  ;;  %v1730_v25 = vmul.f32 0.00390625, %v1729_v22 }
 0x8fc   : > { %v1732_v26 = vsub.f32 %v1730_v25, %v1731_v24  ;;  %v2503_v24 = vld [vmem:[#allocation2 + $0x4] sm:$0xf] }
 0x8fe   : > { %v1733_v27 = vmax.f32 %v1732_v26, 0.0 }
 0x900   : > { %v1734_v28 = vadd.f32 1e-05, %v1733_v27  ;;  %v2542_v27 = vld [vmem:[#allocation2 + $0xc] sm:$0xf] }
 0x902   : > { %2635 = vrsqrt.f32 %v1734_v28  ;;  %vm1741_vm12 = vweird.f32 %v1734_v28 }
 0x908   : > { %v2636_v21 = vpop.eup %2635 }
 0x909   : > { %v1736_v17 = vmul.f32 %v2636_v21, %v1734_v28  ;;  %vm1742_vm11 = vweird.f32 %v2636_v21 }
 0x90a   : > { %vm1743_vm13 = vmor %vm1741_vm12, %vm1742_vm11 }
 0x90b   : > { %v1737_v29 = vmul.f32 %v2636_v21, %v1736_v17 }
 0x90d   : > { %v1738_v30 = vmul.f32 0.5, %v1737_v29 }
 0x90f   : > { %v1739_v31 = vsub.f32 1.5, %v1738_v30 }
 0x911   : > { %v1740_v33 = vmul.f32 %v2636_v21, %v1739_v31  ;;  %v2545_v31 = vld [vmem:[#allocation2 + $0x10] sm:$0xf] }
 0x913   : > { %v1744_v34 = vsel %vm1743_vm13, %v2636_v21, %v1740_v33  ;;  %v2511_v21 = vld [vmem:[#allocation2 + $0xc] sm:$0xf]  ;;  %v2468_v33 = vld [vmem:[%s3319_s2 + $0x24] sm:$0x3] }
 0x914   : > { %v1745_v35 = vmul.f32 %v1744_v34, %v1708_v32  ;;  %v1831_v34 = vpop.permute.xlu0 %1830 }
 0x916   : > { %v1746_v36 = vmul.f32 %v1745_v35, %v1719_v20 }
 0x918   : > { %1748 = vrot.lane.b32.xlu2 %v1746_v36, %s2710_s14 }
 0x920   : > { %1754 = vperm.xlu2 %2624, %v1745_v35  }
 0x928   : > { %2625 = vset.pattern.permute.xlu2 %v2724_v37  ;;  %v2469_v37 = vld [vmem:[%s3319_s2 + $0x26] sm:$0x3] }
 0x972   : > { %v1749_v38 = vpop.permute.xlu2 %1748 }
 0x973   : > { %v1751_v39 = vsub.f32 %v1708_v32, %v1749_v38 }
 0x975   : > { %1762 = vperm.xlu2 %2625, %v1751_v39  }
 0x97a   : > { %v1755_v44 = vpop.permute.xlu2 %1754 }
 0x97b   : > { %v1757_v46 = vmul.f32 %v1755_v44, %v3150_v52  ;;  %v1758_v47 = vmul.f32 %v1755_v44, %v3154_v56  ;;  %v1759_v48 = vmul.f32 %v1755_v44, %v3156_v57 }
 0x97d   : > { %2626 = vset.pattern.permute.xlu2 %v2725_v40  ;;  %v2491_v40 = vld [vmem:[#allocation2 + $0x8] sm:$0xf] }
 0x97e   : > { %1773 = vperm.xlu2 %2626, %v1708_v32  }
 0x9cf   : > { %v1763_v45 = vpop.permute.xlu2 %1762 }
 0x9d0   : > { %v1765_v49 = vadd.f32 %v1763_v45, %v1757_v46  ;;  %v1766_v50 = vadd.f32 %v1763_v45, %v1758_v47  ;;  %v1767_v51 = vadd.f32 %v1763_v45, %v1759_v48 }
 0x9d2   : > { %vm1768_vm5 = vcmp.ge.f32.partialorder %v1765_v49, 0.0  ;;  %vm1769_vm8 = vcmp.ge.f32.partialorder %v1766_v50, 0.0  ;;  %vm1770_vm14 = vcmp.ge.f32.partialorder %v1767_v51, 0.0 }
 0x9d8   : > { %v1774_v53 = vpop.permute.xlu2 %1773 }
 0x9d9   : > { %v1776_v54 = vmul.f32 %v1774_v53, %v1765_v49  ;;  %v1777_v55 = vmul.f32 %v1774_v53, %v1766_v50  ;;  %v1778_v58 = vmul.f32 %v1774_v53, %v1767_v51 }
 0x9db   : > { %v1781_v59 = vsel %vm1770_vm14, %v1767_v51, %v1778_v58  ;;  %v1779_v60 = vsel %vm1768_vm5, %v1765_v49, %v1776_v54  ;;  %v1780_v61 = vsel %vm1769_vm8, %v1766_v50, %v1777_v55  ;;  %v2500_v51 = vld [vmem:[%s3319_s2 + $0x2a] sm:$0x3]  ;;  %v2496_v54 = vld [vmem:[%s3319_s2 + $0x28] sm:$0x3] }
 0x9dc   : > { %v1784_v62 = vmul.f32 %v1781_v59, %v2910_v6  ;;  %v1782_v52 = vmul.f32 %v1779_v60, %v2904_v63  ;;  %v1783_v56 = vmul.f32 %v1780_v61, %v2906_v1 }
 0x9de   : > { %v1786_v57 = vpack.c.bf16 %v1784_v62, %v1784_v62  ;;  %v1785_v0 = vpack.c.bf16 %v1783_v56, %v1782_v52 }
 0x9e0   : > { %v1790_v2 = vrot.slane %v1786_v57, 6  ;;  %v1789_v3 = vrot.slane %v1785_v0, 6 }
 0x9e2   : > { %1793 = vrot.lane.b32.xlu1 %v1790_v2, %s2713_s20  ;;  %1791 = vrot.lane.b32.xlu2 %v1789_v3, %s2713_s20 }
 0xa3c   : > { %v1792_v5 = vpop.permute.xlu2 %1791 }
 0xa3d   : > { %v1795_v7 = vrot.slane %v1792_v5, 4 }
 0xa3f   : > { %v1797_v8 = vsel %vm743_vm2, %v1795_v7, %v1792_v5 }
 0xa40   : > { %1802 = vst.msk [vmem:[#allocation2 + $0x18] sm:$0xcc] %vm2932_vm3, %v1797_v8  ;;  %vm1838_vm3 = vcmask 1039360  }
 0xa47   : > { %v2543_v10 = vld [vmem:[#allocation2 + $0x18] sm:$0xf0]  ;;  %v2474_v11 = vld [vmem:[#allocation2 + $0x14] sm:$0xf0] }
 0xa48   : > { %v2481_v12 = vor.u32 %v2543_v10, %v2480_v4  ;;  %v2477_v13 = vor.u32 %v2539_v9, %v2474_v11  ;;  %v2505_v14 = vld [vmem:[#allocation2 + $0x18] sm:$0xf0]  ;;  %v2546_v22 = vld [vmem:[#allocation2 + $0x14] sm:$0xf0]  ;;  %v2520_v4 = vld [vmem:[%s3319_s2 + $0x2c] sm:$0x3] }
 0xa49   : > { %v2508_v19 = vor.u32 %v2544_v15, %v2505_v14  ;;  %v2504_v26 = vor.u32 %v2546_v22, %v2503_v24  ;;  %v2541_v38 = vld [vmem:[#allocation2 + $0x18] sm:$0xf0]  ;;  %v2524_v15 = vld [vmem:[%s3319_s2 + $0x2e] sm:$0x3] }
 0xa4a   : > { %1944 = vrot.lane.b32.xlu0 %v2481_v12, %s2727_s13  ;;  %1832 = vrot.lane.b32.xlu2 %v2477_v13, %s2726_s12  ;;  %v2492_v42 = vor.u32 %v2541_v38, %v2491_v40 }
 0xa52   : > { %2024 = vrot.lane.b32.xlu0 %v2508_v19, %s2704_s6  ;;  %1834 = vrot.lane.b32.xlu2 %v2481_v12, %s2726_s12 }
 0xa54   : > { %v1794_v16 = vpop.permute.xlu1 %1793 }
 0xa55   : > { %v1796_v20 = vrot.slane %v1794_v16, 4 }
 0xa57   : > { %v1798_v23 = vsel %vm198_vm0, %v1795_v7, %v1796_v20 }
 0xa58   : > { %v1799_v25 = vsel %vm743_vm2, %v1798_v23, %v1794_v16  ;;  %vm1845_vm2 = vcmask 130048  }
 0xa59   : > { %1803 = vst.msk [vmem:[#allocation2 + $0x20] sm:$0xcc] %vm2936_vm4, %v1799_v25  ;;  %2493 = vmatmul.msk.bf16.vlgmr.msra.gmra.mxu1 %vm1845_vm2, %v2468_v33  ;;  %vm1948_vm4 = vcmask 1031168  }
 0xa5a   : > { %2083 = vrot.lane.b32.xlu0 %v2504_v26, %s2708_s10 }
 0xa60   : > { %v2482_v28 = vld [vmem:[#allocation2 + $0x1c] sm:$0xf0]  ;;  %v2513_v18 = vld [vmem:[#allocation2 + $0x20] sm:$0xf0] }
 0xa61   : > { %v2547_v17 = vld [vmem:[#allocation2 + $0x1c] sm:$0xf0]  ;;  %v2485_v29 = vor.u32 %v2542_v27, %v2482_v28  ;;  %v2516_v32 = vor.u32 %v2545_v31, %v2513_v18 }
 0xa62   : > { %v2512_v30 = vor.u32 %v2547_v17, %v2511_v21 }
 0xa63   : > { %1946 = vrot.lane.b32.xlu1 %v2485_v29, %s2727_s13  ;;  %1836 = vrot.lane.b32.xlu2 %v2485_v29, %s2726_s12  ;;  %s188_s12 = sand.u32 1, %s2693_s16  }
 0xa64   : > { %2026 = vrot.lane.b32.xlu0 %v2512_v30, %s2704_s6 }
 0xa6b   : > { %1940 = vrot.lane.b32.xlu1 %v3172_v43, %s2727_s13  ;;  %2022 = vrot.lane.b32.xlu2 %v2504_v26, %s2704_s6 }
 0xa6c   : > { %2148 = vrot.lane.b32.xlu0 %v2512_v30, %s2709_s11 }
 0xa73   : > { %2085 = vrot.lane.b32.xlu1 %v2508_v19, %s2708_s10  ;;  %1942 = vrot.lane.b32.xlu2 %v2477_v13, %s2727_s13  ;;  %s2550_s13 = smul.u32 12, %s2777_s19 }
 0xa74   : > { %2144 = vrot.lane.b32.xlu0 %v2504_v26, %s2709_s11 }
 0xa7b   : > { %2028 = vrot.lane.b32.xlu1 %v2516_v32, %s2704_s6  ;;  %2087 = vrot.lane.b32.xlu2 %v2512_v30, %s2708_s10  ;;  %s2296_s6 = scalar_lea.hbm %s3321_s4, %s2550_s13 }
 0xa83   : > { %2150 = vrot.lane.b32.xlu1 %v2516_v32, %s2709_s11  ;;  %2146 = vrot.lane.b32.xlu2 %v2508_v19, %s2709_s11  ;;  %s2285_s11 = scalar_lea.sflag [#allocation4], %s188_s12 }
 0xa8b   : > { %2089 = vrot.lane.b32.xlu2 %v2516_v32, %s2708_s10  ;;  %s2300_s10 = sshll.u32 %s2296_s6, 4  ;;  %s2301_s10 = int_to_ptr.hbm [resolvable:$true] %s2300_s10 }
 0xa8c   : > { %s2653_s27 = sshra.s32 %s2301_s10, 4  ;;  %s2654_s27 = int_to_ptr.hbm [resolvable:$true] %s2653_s27 }
 0xa8d   : > { %s2655_s28 = scalar_lea.hbm %s2654_s27, 12  ;;  %p2660_p0 = scmp.lt.s32.totalorder %s2654_s27, %s3321_s4 }
 0xa8e   : > { %p2656_p11 = scmp.ne.s32.totalorder %s2654_s27, %s2655_s28  ;;  %p2661_p1 = scmp.lt.s32.totalorder %s2659_s5, %s2655_s28 }
 0xa90   : > { %p2657_p12 = pnand %p2656_p11, %p2794_p5  ;;  %p2662_p2 = por %p2661_p1, %p2660_p0 }
 0xa92   : > { %p2658_p13 = pneg %p2657_p12 }
 0xa94   : > { %p2663_p3 = pnand %p2662_p2, %p2658_p13 }
 0xaa4   : > { %v1833_v35 = vpop.permute.xlu2 %1832 }
 0xaa5   : > { %v1839_v36 = vsel %vm1838_vm3, %v1831_v34, %v1833_v35 }
 0xaa6   : > { %1856 = vmatpush.bf16.msrb.mxu2 %v1839_v36 }
 0xaa9   : > { %2486 = vmatmul.msk.bf16.vlgmr.msrb.gmra.mxu2 %vm1845_vm2, %v2469_v37 }
 0xaaa   : > { %1919 = vmatpush.bf16.msra.mxu2 %v2477_v13 }
 0xaac   : > { %v1835_v39 = vpop.permute.xlu2 %1834 }
 0xaad   : > { %v1840_v41 = vsel %vm1838_vm3, %v1833_v35, %v1835_v39 }
 0xaae   : > { %1869 = vmatpush.bf16.msrb.mxu3 %v1840_v41 }
 0xab1   : > { %2487 = vmatmul.msk.bf16.vlgmr.msrb.gmra.mxu3 %vm1845_vm2, %v2469_v37 }
 0xab2   : > { %1932 = vmatpush.bf16.msra.mxu3 %v2492_v42 }
 0xab9   : > { %2494 = vmatmul.msk.bf16.vlgmr.msra.gmra.mxu2 %vm1845_vm2, %v2468_v33 }
 0xabc   : > { %v1945_v43 = vpop.permute.xlu0 %1944 }
 0xabd   : > { %v1837_v44 = vpop.permute.xlu2 %1836 }
 0xabe   : > { %v1841_v45 = vsel %vm1838_vm3, %v1835_v39, %v1837_v44 }
 0xabf   : > { %1882 = vmatpush.bf16.msra.mxu0 %v1841_v45 }
 0xac1   : > { %2495 = vmatmul.msk.bf16.vlgmr.msra.gmra.mxu3 %vm1845_vm2, %v2468_v33 }
 0xac2   : > { %2488 = vmatmul.msk.bf16.vlgmr.msra.gmra.mxu0 %vm1845_vm2, %v2469_v37 }
 0xac4   : > { %v2025_v46 = vpop.permute.xlu0 %2024 }
 0xac5   : > { %v2023_v47 = vpop.permute.xlu2 %2022 }
 0xac6   : > { %v2030_v48 = vsel %vm219_vm6, %v2023_v47, %v2025_v46 }
 0xac7   : > { %2046 = vmatpush.bf16.msrb.mxu3 %v2030_v48 }
 0xacc   : > { %v2084_v49 = vpop.permute.xlu0 %2083 }
 0xacd   : > { %v1943_v50 = vpop.permute.xlu2 %1942 }
 0xace   : > { %v1950_v53 = vsel %vm1948_vm4, %v1943_v50, %v1945_v43 }
 0xacf   : > { %1978 = vmatpush.bf16.msrb.mxu1 %v1950_v53 }
 0xad1   : > { %2517 = vmatmul.msk.bf16.vlgmr.msrb.gmra.mxu3 %vm1845_vm2, %v2500_v51 }
 0xad2   : > { %2498 = vmatmul.msk.bf16.vlgmr.msrb.gmra.mxu1 %vm1845_vm2, %v2496_v54 }
 0xad5   : > { %v1947_v55 = vpop.permute.xlu1 %1946  ;;  %v2088_v59 = vpop.permute.xlu2 %2087 }
 0xad6   : > { %v1951_v58 = vsel %vm1948_vm4, %v1945_v43, %v1947_v55  ;;  %v2027_v60 = vpop.permute.xlu0 %2026  ;;  %v1908_v19 = vpop.f32.mrf.mxu1 }
 0xad7   : > { %1991 = vmatpush.bf16.msrb.mxu2 %v1951_v58  ;;  %v2031_v56 = vsel %vm219_vm6, %v2025_v46, %v2027_v60 }
 0xada   : > { %2499 = vmatmul.msk.bf16.vlgmr.msrb.gmra.mxu2 %vm1845_vm2, %v2496_v54 }
 0xadd   : > { %v1941_v61 = vpop.permute.xlu1 %1940  ;;  %v2147_v52 = vpop.permute.xlu2 %2146 }
 0xade   : > { %v1949_v62 = vsel %vm1948_vm4, %v1941_v61, %v1943_v50  ;;  %v2149_v57 = vpop.permute.xlu0 %2148  ;;  %v1910_v16 = vpop.f32.mrf.mxu1 }
 0xadf   : > { %1965 = vmatpush.bf16.msrb.mxu0 %v1949_v62  ;;  %v2153_v7 = vsel %vm589_vm1, %v2147_v52, %v2149_v57 }
 0xae2   : > { %2497 = vmatmul.msk.bf16.vlgmr.msrb.gmra.mxu0 %vm1845_vm2, %v2496_v54 }
 0xae3   : > { %2059 = vmatpush.bf16.msra.mxu0 %v2031_v56 }
 0xae5   : > { %v2086_v0 = vpop.permute.xlu1 %2085  ;;  %v2090_v5 = vpop.permute.xlu2 %2089 }
 0xae6   : > { %v2091_v2 = vsel %vm521_vm15, %v2084_v49, %v2086_v0  ;;  %v2092_v3 = vsel %vm521_vm15, %v2086_v0, %v2088_v59  ;;  %v2093_v8 = vsel %vm521_vm15, %v2088_v59, %v2090_v5  ;;  %v2145_v9 = vpop.permute.xlu0 %2144 }
 0xae7   : > { %2107 = vmatpush.bf16.msra.mxu2 %v2091_v2  ;;  %2120 = vmatpush.bf16.msra.mxu3 %v2092_v3  ;;  %v2152_v12 = vsel %vm589_vm1, %v2145_v9, %v2147_v52 }
 0xae8   : > { %2133 = vmatpush.bf16.msrb.mxu0 %v2093_v8 }
 0xaea   : > { %2521 = vmatmul.msk.bf16.vlgmr.msra.gmra.mxu2 %vm1845_vm2, %v2520_v4  ;;  %2522 = vmatmul.msk.bf16.vlgmr.msra.gmra.mxu3 %vm1845_vm2, %v2520_v4 }
 0xaeb   : > { %2181 = vmatpush.bf16.msrb.mxu2 %v2153_v7 }
 0xaed   : > { %v2029_v10 = vpop.permute.xlu1 %2028 }
 0xaee   : > { %v2032_v11 = vsel %vm219_vm6, %v2027_v60, %v2029_v10 }
 0xaef   : > { %2072 = vmatpush.bf16.msra.mxu1 %v2032_v11 }
 0xaf2   : > { %2518 = vmatmul.msk.bf16.vlgmr.msra.gmra.mxu0 %vm1845_vm2, %v2500_v51  ;;  %2519 = vmatmul.msk.bf16.vlgmr.msra.gmra.mxu1 %vm1845_vm2, %v2500_v51 }
 0xaf3   : > { %2168 = vmatpush.bf16.msrb.mxu1 %v2152_v12 }
 0xaf5   : > { %v2151_v13 = vpop.permute.xlu1 %2150 }
 0xaf6   : > { %v2154_v14 = vsel %vm589_vm1, %v2149_v57, %v2151_v13 }
 0xaf7   : > { %2194 = vmatpush.bf16.msrb.mxu3 %v2154_v14 }
 0xafa   : > { %2526 = vmatmul.msk.bf16.vlgmr.msrb.gmra.mxu2 %vm1845_vm2, %v2524_v15  ;;  %2527 = vmatmul.msk.bf16.vlgmr.msrb.gmra.mxu3 %vm1845_vm2, %v2524_v15 }
 0xb02   : > { %2523 = vmatmul.msk.bf16.vlgmr.msrb.gmra.mxu0 %vm1845_vm2, %v2520_v4  ;;  %2525 = vmatmul.msk.bf16.vlgmr.msrb.gmra.mxu1 %vm1845_vm2, %v2524_v15 }
 0xb2c   : > { %v1858_v20 = vpop.f32.mrf.mxu2 }
 0xb2d   : > { %v1909_v22 = vadd.f32 %v1908_v19, %v1858_v20 }
 0xb34   : > { %v1871_v23 = vpop.f32.mrf.mxu3  ;;  %v1860_v24 = vpop.f32.mrf.mxu2 }
 0xb3c   : > { %v1873_v25 = vpop.f32.mrf.mxu3  ;;  %v1921_v26 = vpop.f32.mrf.mxu2 }
 0xb3d   : > { %v1922_v41 = vadd.f32 %v1921_v26, %v1871_v23  ;;  %v2728_v25 = vmov 9  }
 0xb3e   : > { %2627 = vset.pattern.permute.xlu0 %v2728_v25 }
 0xb3f   : > { %v1884_v27 = vpop.f32.mrf.mxu0 }
 0xb44   : > { %v1934_v28 = vpop.f32.mrf.mxu3  ;;  %v1923_v21 = vpop.f32.mrf.mxu2 }
 0xb45   : > { %v1935_v49 = vadd.f32 %v1934_v28, %v1884_v27 }
 0xb47   : > { %v1886_v17 = vpop.f32.mrf.mxu0 }
 0xb4c   : > { %v1936_v29 = vpop.f32.mrf.mxu3 }
 0xb4f   : > { %v1980_v30 = vpop.f32.mrf.mxu1 }
 0xb50   : > { %v1998_v44 = vadd.f32 %v1980_v30, %v1922_v41 }
 0xb54   : > { %v2048_v18 = vpop.f32.mrf.mxu3 }
 0xb57   : > { %v1982_v31 = vpop.f32.mrf.mxu1 }
 0xb5c   : > { %v2050_v32 = vpop.f32.mrf.mxu3 }
 0xb5d   : > { %v1993_v33 = vpop.f32.mrf.mxu2 }
 0xb5e   : > { %v1999_v50 = vadd.f32 %v1993_v33, %v1935_v49  ;;  %v2203_v33 = vld [vmem:[%s3320_s3] sm:$0xf] }
 0xb5f   : > { %v1967_v34 = vpop.f32.mrf.mxu0 }
 0xb60   : > { %v1997_v47 = vadd.f32 %v1967_v34, %v1909_v22 }
 0xb62   : > { %v2078_v51 = vadd.f32 %v2048_v18, %v1997_v47 }
 0xb65   : > { %v1995_v35 = vpop.f32.mrf.mxu2 }
 0xb67   : > { %v1969_v36 = vpop.f32.mrf.mxu0 }
 0xb6d   : > { %v2109_v37 = vpop.f32.mrf.mxu2  ;;  %v2122_v38 = vpop.f32.mrf.mxu3 }
 0xb6e   : > { %v2139_v58 = vadd.f32 %v2109_v37, %v2078_v51 }
 0xb6f   : > { %v2061_v39 = vpop.f32.mrf.mxu0  ;;  %v2074_v40 = vpop.f32.mrf.mxu1 }
 0xb70   : > { %v2079_v48 = vadd.f32 %v2061_v39, %v1998_v44  ;;  %v2080_v59 = vadd.f32 %v2074_v40, %v1999_v50  ;;  %v2730_v39 = vmov 11  }
 0xb71   : > { %2629 = vset.pattern.permute.xlu1 %v2730_v39 }
 0xb72   : > { %v2140_v53 = vadd.f32 %v2122_v38, %v2079_v48  ;;  %v2729_v38 = vmov 10  }
 0xb75   : > { %v2111_v42 = vpop.f32.mrf.mxu2  ;;  %v2124_v43 = vpop.f32.mrf.mxu3 }
 0xb77   : > { %v2063_v45 = vpop.f32.mrf.mxu0  ;;  %v2076_v46 = vpop.f32.mrf.mxu1 }
 0xb7d   : > { %v2183_v54 = vpop.f32.mrf.mxu2  ;;  %v2196_v55 = vpop.f32.mrf.mxu3 }
 0xb7e   : > { %v3263_v60 = vadd.f32 %v2183_v54, %v2140_v53 }
 0xb7f   : > { %v2135_v61 = vpop.f32.mrf.mxu0  ;;  %v2170_v62 = vpop.f32.mrf.mxu1 }
 0xb80   : > { %v2205_v52 = vmul.f32 %v3263_v60, %v2906_v1  ;;  %v2141_v56 = vadd.f32 %v2135_v61, %v2080_v59  ;;  %v2200_v57 = vadd.f32 %v2170_v62, %v2139_v58 }
 0xb82   : > { %v2216_v0 = vmul.f32 %v2205_v52, %v2205_v52  ;;  %v2204_v2 = vmul.f32 %v2200_v57, %v2904_v63  ;;  %v2202_v3 = vadd.f32 %v2196_v55, %v2141_v56  ;;  %v2208_v4 = vsel %vm198_vm0, %v2205_v52, 0.0 }
 0xb84   : > { %v2215_v5 = vmul.f32 %v2204_v2, %v2204_v2  ;;  %v2206_v7 = vmul.f32 %v2202_v3, %v2910_v6  ;;  %v2207_v8 = vsel %vm198_vm0, %v2204_v2, 0.0  ;;  %v2219_v14 = vsel %vm198_vm0, %v2216_v0, 0.0 }
 0xb85   : > { %v2209_v9 = vadd.f32 %v2208_v4, %v2207_v8  ;;  %v2185_v10 = vpop.f32.mrf.mxu2  ;;  %v2198_v11 = vpop.f32.mrf.mxu3 }
 0xb86   : > { %v2210_v12 = vsel %vm198_vm0, %v2206_v7, 0.0  ;;  %v2217_v13 = vmul.f32 %v2206_v7, %v2206_v7  ;;  %v2218_v1 = vsel %vm198_vm0, %v2215_v5, 0.0 }
 0xb87   : > { %v2211_v15 = vadd.f32 %v2210_v12, %v2209_v9  ;;  %v2220_v63 = vadd.f32 %v2219_v14, %v2218_v1  ;;  %v2137_v19 = vpop.f32.mrf.mxu0  ;;  %v2172_v16 = vpop.f32.mrf.mxu1 }
 0xb88   : > { %v2221_v6 = vsel %vm198_vm0, %v2217_v13, 0.0 }
 0xb89   : > { %2212 = vadd.xlane.f32.xlu1 %v2211_v15  ;;  %v2222_v20 = vadd.f32 %v2221_v6, %v2220_v63 }
 0xb8b   : > { %2223 = vadd.xlane.f32.xlu2 %v2222_v20 }
 0xba2   : > { %2268 = vperm.xlu1 %2629, %v2203_v33  }
 0xbfc   : > { %v2213_v22 = vpop.xlane.xlu1 %2212 }
 0xbfd   : > { %v2214_v23 = vmul.f32 0.00390625, %v2213_v22 }
 0xbfe   : > { %v2224_v24 = vpop.xlane.xlu2 %2223 }
 0xbff   : > { %v2226_v26 = vmul.f32 %v2214_v23, %v2214_v23  ;;  %v2225_v27 = vmul.f32 0.00390625, %v2224_v24 }
 0xc01   : > { %v2227_v28 = vsub.f32 %v2225_v27, %v2226_v26 }
 0xc03   : > { %v2228_v21 = vmax.f32 %v2227_v28, 0.0 }
 0xc05   : > { %v2229_v17 = vadd.f32 1e-05, %v2228_v21 }
 0xc07   : > { %2637 = vrsqrt.f32 %v2229_v17  ;;  %vm2236_vm15 = vweird.f32 %v2229_v17 }
 0xc0d   : > { %v2638_v29 = vpop.eup %2637 }
 0xc0e   : > { %v2231_v30 = vmul.f32 %v2638_v29, %v2229_v17  ;;  %vm2237_vm6 = vweird.f32 %v2638_v29 }
 0xc0f   : > { %vm2238_vm1 = vmor %vm2236_vm15, %vm2237_vm6 }
 0xc10   : > { %v2232_v18 = vmul.f32 %v2638_v29, %v2231_v30 }
 0xc12   : > { %v2233_v31 = vmul.f32 0.5, %v2232_v18 }
 0xc14   : > { %v2234_v32 = vsub.f32 1.5, %v2233_v31  ;;  %v2269_v50 = vpop.permute.xlu1 %2268 }
 0xc16   : > { %v2235_v34 = vmul.f32 %v2638_v29, %v2234_v32 }
 0xc18   : > { %v2239_v35 = vsel %vm2238_vm1, %v2638_v29, %v2235_v34 }
 0xc19   : > { %v2240_v36 = vmul.f32 %v2239_v35, %v2203_v33 }
 0xc1b   : > { %v2241_v37 = vmul.f32 %v2240_v36, %v2214_v23 }
 0xc1d   : > { %2243 = vrot.lane.b32.xlu0 %v2241_v37, %s2710_s14  ;;  %s2548_s14 = smul.u32 12, %s188_s12 }
 0xc1f   : > { %s190_s19 = scalar_lea.vmem [#allocation3], %s2548_s14 }
 0xc20   : > { %s2298_s23 = sshll.u32 %s190_s19, 4  ;;  %s2299_s23 = int_to_ptr.vmem [resolvable:$true] %s2298_s23 }
 0xc25   : > { %2249 = vperm.xlu0 %2627, %v2240_v36  }
 0xc2d   : > { %2628 = vset.pattern.permute.xlu0 %v2729_v38 }
 0xc8f   : > { %v2244_v40 = vpop.permute.xlu0 %2243 }
 0xc90   : > { %v2246_v41 = vsub.f32 %v2203_v33, %v2244_v40 }
 0xc92   : > { %2257 = vperm.xlu0 %2628, %v2246_v41  }
 0xc97   : > { %v2250_v42 = vpop.permute.xlu0 %2249 }
 0xc98   : > { %v2252_v43 = vmul.f32 %v2250_v42, %v2200_v57  ;;  %v2253_v44 = vmul.f32 %v2250_v42, %v3263_v60  ;;  %v2254_v45 = vmul.f32 %v2250_v42, %v2202_v3 }
 0xc9a   : > { %2630 = vset.pattern.permute.xlu0 %v2730_v39 }
 0xd04   : > { %v2258_v46 = vpop.permute.xlu0 %2257 }
 0xd05   : > { %v2260_v47 = vadd.f32 %v2258_v46, %v2252_v43  ;;  %v2261_v48 = vadd.f32 %v2258_v46, %v2253_v44  ;;  %v2262_v49 = vadd.f32 %v2258_v46, %v2254_v45 }
 0xd07   : > { %vm2264_vm7 = vcmp.ge.f32.partialorder %v2261_v48, 0.0  ;;  %vm2265_vm9 = vcmp.ge.f32.partialorder %v2262_v49, 0.0  ;;  %v2271_v51 = vmul.f32 %v2269_v50, %v2260_v47  ;;  %v2272_v53 = vmul.f32 %v2269_v50, %v2261_v48 }
 0xd08   : > { %v2273_v54 = vmul.f32 %v2269_v50, %v2262_v49  ;;  %vm2263_vm10 = vcmp.ge.f32.partialorder %v2260_v47, 0.0 }
 0xd09   : > { %v2275_v55 = vsel %vm2264_vm7, %v2261_v48, %v2272_v53  ;;  %v2274_v60 = vsel %vm2263_vm10, %v2260_v47, %v2271_v51 }
 0xd0a   : > { %v2276_v58 = vsel %vm2265_vm9, %v2262_v49, %v2273_v54  ;;  %v2279_v59 = vrot.slane %v2275_v55, 4 }
 0xd0b   : > { %2283 = vst [vmem:[%s190_s19 + $0x8] sm:$0xf] %v2276_v58 }
 0xd0c   : > { %v2280_v61 = vsel %vm198_vm0, %v2274_v60, %v2279_v59 }
 0xd0d   : > { %2282 = vst [vmem:[%s190_s19] sm:$0xff] %v2280_v61 }
 0xd0e   : > { %2666 = shalt.err (!%p2663_p3)
}
 0xd0f   : > { %2551 = dma.vmem_to_hbm [thread:$0]  (%p2794_p5), %s2299_s23, 192, %s2301_s10, %s2285_s11  }
 0xd10 PF: > { %p2557_p4 = scmp.ge.s32.totalorder %s2701_s18, 2  ;;  %s2312_s9 = sand.u32 1, %s2689_s15  }
 0xd11   : > { %s2313_s12 = scalar_lea.sflag [#allocation4], %s2312_s9 }
 0xd12   : > { %p2554_p7 = pnand %p2557_p4, %p2798_p6 }
 0xd14   : > { %p2555_p8 = pneg %p2554_p7 }
 0xd16   : > { %2684 = dma.done.wait (%p2555_p8), %s2313_s12, 192  }
 0xd17   : > { %2686 = vsyncadd (%p2555_p8), %s2313_s12, 4294967104  ;;  %p14_p9 = scmp.ge.s32.totalorder %s2781_s21, 4   ;;  %s3328_s15 = smov %s2693_s16 }
 0xd18   : > { %s3329_s16 = smov %s2697_s17  ;;  %s3330_s17 = smov %s2792_s24 }
 0xd19   : > { %s3331_s18 = smov %s2781_s21  ;;  %16 = sbr.rel (!%p14_p9) target bundleno = 3 (0x3), region = 94 }
 0xd1e   :  { %2319 = vsyncpa [#allocation4], 1 }
 0xd1f   :  { %2321 = vsyncpa [#allocation4 + $0x1], 1 }

</bundles_post_ra>
